<compile_context>
chip_gen: v5e
topology: v5e:2x2
jax: 0.10.0
libtpu: 0.0.40
codegen_flags: <defaults>
</compile_context>

<pallas_src>
import functools

import jax
import jax.numpy as jnp
from jax.experimental import pallas as pl
from jax.experimental.pallas import tpu as pltpu


def _swa_kernel(q_ref, k_ref, v_ref, o_ref, *, scale):
    # Input refs are natural-layout (T, D) blocks; output ref is lane-dense (D, T).
    D = q_ref.shape[1]
    f32 = jnp.float32

    # Exact in-kernel transpose on the (otherwise idle) MXU: eye(D) @ x^T.
    # HIGHEST precision preserves the full f32 mantissa through the bf16-pass
    # decomposition, so this is an exact transpose; per-step MXU work is
    # negligible next to the exp-dominated hot path.
    eye = (jax.lax.broadcasted_iota(jnp.int32, (D, D), 0)
           == jax.lax.broadcasted_iota(jnp.int32, (D, D), 1)).astype(f32)
    dn = (((1,), (1,)), ((), ()))  # contract eye dim1 with x dim1 -> (D, T)

    def lane_dense(ref):
        return jax.lax.dot_general(
            eye, ref[...].astype(f32), dn,
            precision=jax.lax.Precision.HIGHEST,
            preferred_element_type=f32)

    # Pre-scale q once (T*D muls) instead of scaling the (D, D, T) scores.
    q = lane_dense(q_ref) * scale            # (D, T)
    k = lane_dense(k_ref)                    # (D, T)
    v = lane_dense(v_ref)                    # (D, T)

    # max_l q*k[l] == q*kmax if q>=0 else q*kmin — bit-identical to the full
    # (D, D, T) max reduce, but only needs (1, T)-sized reductions of k.
    kmax = jnp.max(k, axis=0, keepdims=True)  # (1, T)
    kmin = jnp.min(k, axis=0, keepdims=True)  # (1, T)
    m = q * jnp.where(q >= 0.0, kmax, kmin)   # (D, T): rowwise max of scores

    # Lane-dense hot path: s[a, l, t] = q[a, t] * k[l, t].
    s = q[:, None, :] * k[None, :, :]         # (D, D, T)  VPU
    e = jnp.exp(s - m[:, None, :])            # (D, D, T)  EUP, e <= 1
    den = jnp.sum(e, axis=1)                  # (D, T)     sublane reduce
    num = jnp.sum(e * v[None, :, :], axis=1)  # (D, T)     fused weighted sum
    out = num * pl.reciprocal(den, approx=True)
    o_ref[...] = out.astype(o_ref.dtype)


def shifted_window_attention(Q, K, V, dim, window_size=None, max_tile=None):
    """Q, K, V: (B, H, W, D) channels-last. Returns (B, H, W, D)."""
    del window_size  # unused by the reference forward pass (module ignores it)
    B, H, W, D = Q.shape
    N = B * H * W
    LANE = 128

    # ---- per-chip tile cap (safe fallback if hardware query is unavailable) --
    if max_tile is None:
        max_tile = 4096  # fits comfortably in v7x's 64 MiB physical VMEM
        try:
            info = pltpu.get_tpu_info()
            if getattr(info, "vmem_capacity_bytes", 0) >= 100 * 1024 * 1024:
                max_tile = 8192  # v5e/v6e: 128 MiB VMEM, single TensorCore
        except Exception:
            pass

    # ---- tile / grid selection (lane axis multiple of 128, balanced blocks) --
    n_lane_blocks = pl.cdiv(N, LANE)
    max_tile_blocks = max(1, max_tile // LANE)
    grid = pl.cdiv(n_lane_blocks, max_tile_blocks)
    tile_blocks = pl.cdiv(n_lane_blocks, grid)   # balance so the tail step is ~full
    grid = pl.cdiv(n_lane_blocks, tile_blocks)
    tile = tile_blocks * LANE
    n_pad = grid * tile

    # ---- natural (N, D) layout; zero-pad positions only if needed ----------
    # Padded positions give s = 0 -> uniform softmax over v = 0 -> out = 0 and
    # are sliced off below (also holds with the kmax/kmin max trick).
    def flat(x):
        xf = x.reshape(N, D)
        if n_pad != N:
            xf = jnp.pad(xf, ((0, n_pad - N), (0, 0)))
        return xf

    qf, kf, vf = flat(Q), flat(K), flat(V)

    scale = 1.0 / (float(dim) ** 0.5)
    kernel = functools.partial(_swa_kernel, scale=scale)

    itemsize = jnp.dtype(Q.dtype).itemsize
    cost = pl.CostEstimate(
        flops=11 * N * D * D,          # 3 MXU transposes + elementwise chain
        transcendentals=N * D * D,
        bytes_accessed=4 * N * D * itemsize,
    )

    # VMEM budget: at tile=4096 the worst case (lane-padded (tile, D) input
    # buffers double-buffered + three (D, D, tile) f32 temporaries) is ~26 MiB;
    # at tile=8192 (only selected on 128-MiB-VMEM chips) it is ~50 MiB.
    vmem_limit = (64 if tile <= 4096 else 100) * 1024 * 1024

    out_t = pl.pallas_call(
        kernel,
        out_shape=jax.ShapeDtypeStruct((D, n_pad), Q.dtype),
        grid_spec=pltpu.PrefetchScalarGridSpec(
            num_scalar_prefetch=0,
            grid=(grid,),
            in_specs=[
                pl.BlockSpec((tile, D), lambda i: (i, 0)),
                pl.BlockSpec((tile, D), lambda i: (i, 0)),
                pl.BlockSpec((tile, D), lambda i: (i, 0)),
            ],
            out_specs=pl.BlockSpec((D, tile), lambda i: (0, i)),
        ),
        compiler_params=pltpu.CompilerParams(
            dimension_semantics=("parallel",),
            vmem_limit_bytes=vmem_limit,
        ),
        cost_estimate=cost,
    )(qf, kf, vf)

    return out_t[:, :N].T.reshape(B, H, W, D)


def _reference(Q, K, V, dim):
    s = jnp.einsum('bhwk,bhwl->bhwkl', Q, K) / (float(dim) ** 0.5)
    p = jax.nn.softmax(s, axis=-1)
    return jnp.einsum('bhwkl,bhwl->bhwk', p, V)


if __name__ == "__main__":
    # Module config (window_size is unused by the reference forward pass).
    dim = 16
    window_size = 4

    B, H, W, D = 2, 8, 8, dim
    key = jax.random.PRNGKey(0)
    kq, kk, kv = jax.random.split(key, 3)
    Q = jax.random.normal(kq, (B, H, W, D), dtype=jnp.float32)
    K = jax.random.normal(kk, (B, H, W, D), dtype=jnp.float32)
    V = jax.random.normal(kv, (B, H, W, D), dtype=jnp.float32)

    out = shifted_window_attention(Q, K, V, dim, window_size)
    out = jax.block_until_ready(out)

    ref = _reference(Q, K, V, dim)
    assert out.shape == (B, H, W, D)
    # Tolerance covers the approximate EUP reciprocal on the softmax
    # denominator plus headroom for MXU rounding in the in-kernel transpose.
    assert jnp.allclose(out, ref, atol=1e-2, rtol=1e-2), "mismatch vs reference"

    print("KERNEL_OK")
</pallas_src>

<mosaic_0001>
module attributes {stable_mosaic.version = 11 : i64} {
  func.func @_swa_kernel(%arg0: i32, %arg1: memref<128x16xf32, #tpu.memory_space<vmem>>, %arg2: memref<128x16xf32, #tpu.memory_space<vmem>>, %arg3: memref<128x16xf32, #tpu.memory_space<vmem>>, %arg4: memref<16x128xf32, #tpu.memory_space<vmem>>) attributes {dimension_semantics = [#tpu.dimension_semantics<parallel>], iteration_bounds = array<i64: 1>, scalar_prefetch = 0 : i64, scratch_operands = 0 : i64, tpu.core_type = #tpu.core_type<tc>, window_params = [{transform_indices = @transform_0, window_bounds = array<i64: 128, 16>}, {transform_indices = @transform_1, window_bounds = array<i64: 128, 16>}, {transform_indices = @transform_2, window_bounds = array<i64: 128, 16>}, {transform_indices = @transform_3, window_bounds = array<i64: 16, 128>}]} {
    %0 = tpu.iota {dimensions = array<i32: 0>} : vector<16x16xi32>
    %1 = tpu.iota {dimensions = array<i32: 1>} : vector<16x16xi32>
    %2 = arith.cmpi eq, %0, %1 : vector<16x16xi32>
    %3 = arith.extui %2 : vector<16x16xi1> to vector<16x16xi32>
    %4 = arith.sitofp %3 : vector<16x16xi32> to vector<16x16xf32>
    %c0 = arith.constant 0 : index
    %c0_0 = arith.constant 0 : index
    %5 = vector.load %arg1[%c0, %c0_0] : memref<128x16xf32, #tpu.memory_space<vmem>>, vector<128x16xf32>
    %cst = arith.constant dense<0.000000e+00> : vector<16x128xf32>
    %6 = tpu.matmul %4, %5, %cst {dimension_numbers = #tpu.dot_dimension_numbers<[1], [1], [0], [0], [0, 0, 1, 0], [], []>, precision = #tpu.contract_precision<fp32>} : vector<16x16xf32>, vector<128x16xf32>, vector<16x128xf32> -> vector<16x128xf32>
    %cst_1 = arith.constant 2.500000e-01 : f32
    %7 = vector.broadcast %cst_1 : f32 to vector<16x128xf32>
    %8 = arith.mulf %6, %7 : vector<16x128xf32>
    %c0_2 = arith.constant 0 : index
    %c0_3 = arith.constant 0 : index
    %9 = vector.load %arg2[%c0_2, %c0_3] : memref<128x16xf32, #tpu.memory_space<vmem>>, vector<128x16xf32>
    %cst_4 = arith.constant dense<0.000000e+00> : vector<16x128xf32>
    %10 = tpu.matmul %4, %9, %cst_4 {dimension_numbers = #tpu.dot_dimension_numbers<[1], [1], [0], [0], [0, 0, 1, 0], [], []>, precision = #tpu.contract_precision<fp32>} : vector<16x16xf32>, vector<128x16xf32>, vector<16x128xf32> -> vector<16x128xf32>
    %c0_5 = arith.constant 0 : index
    %c0_6 = arith.constant 0 : index
    %11 = vector.load %arg3[%c0_5, %c0_6] : memref<128x16xf32, #tpu.memory_space<vmem>>, vector<128x16xf32>
    %cst_7 = arith.constant dense<0.000000e+00> : vector<16x128xf32>
    %12 = tpu.matmul %4, %11, %cst_7 {dimension_numbers = #tpu.dot_dimension_numbers<[1], [1], [0], [0], [0, 0, 1, 0], [], []>, precision = #tpu.contract_precision<fp32>} : vector<16x16xf32>, vector<128x16xf32>, vector<16x128xf32> -> vector<16x128xf32>
    %cst_8 = arith.constant dense<0xFF800000> : vector<128xf32>
    %13 = vector.multi_reduction <maximumf>, %10, %cst_8 [0] : vector<16x128xf32> to vector<128xf32>
    %14 = vector.shape_cast %13 : vector<128xf32> to vector<1x128xf32>
    %cst_9 = arith.constant dense<0x7F800000> : vector<128xf32>
    %15 = vector.multi_reduction <minimumf>, %10, %cst_9 [0] : vector<16x128xf32> to vector<128xf32>
    %16 = vector.shape_cast %15 : vector<128xf32> to vector<1x128xf32>
    %cst_10 = arith.constant 0.000000e+00 : f32
    %17 = vector.broadcast %cst_10 : f32 to vector<16x128xf32>
    %18 = arith.cmpf oge, %8, %17 : vector<16x128xf32>
    %19 = vector.shape_cast %14 : vector<1x128xf32> to vector<1x128xf32>
    %20 = vector.broadcast %19 : vector<1x128xf32> to vector<16x128xf32>
    %21 = vector.shape_cast %16 : vector<1x128xf32> to vector<1x128xf32>
    %22 = vector.broadcast %21 : vector<1x128xf32> to vector<16x128xf32>
    %23 = arith.select %18, %20, %22 : vector<16x128xi1>, vector<16x128xf32>
    %24 = arith.mulf %8, %23 : vector<16x128xf32>
    %25 = vector.shape_cast %8 : vector<16x128xf32> to vector<16x1x128xf32>
    %26 = vector.shape_cast %10 : vector<16x128xf32> to vector<1x16x128xf32>
    %27 = vector.broadcast %25 : vector<16x1x128xf32> to vector<16x16x128xf32>
    %28 = vector.broadcast %26 : vector<1x16x128xf32> to vector<16x16x128xf32>
    %29 = arith.mulf %27, %28 : vector<16x16x128xf32>
    %30 = vector.shape_cast %24 : vector<16x128xf32> to vector<16x1x128xf32>
    %31 = vector.broadcast %30 : vector<16x1x128xf32> to vector<16x16x128xf32>
    %32 = arith.subf %29, %31 : vector<16x16x128xf32>
    %33 = math.exp %32 : vector<16x16x128xf32>
    %cst_11 = arith.constant dense<0.000000e+00> : vector<16x128xf32>
    %34 = vector.multi_reduction <add>, %33, %cst_11 [1] : vector<16x16x128xf32> to vector<16x128xf32>
    %35 = vector.shape_cast %12 : vector<16x128xf32> to vector<1x16x128xf32>
    %36 = vector.broadcast %35 : vector<1x16x128xf32> to vector<16x16x128xf32>
    %37 = arith.mulf %33, %36 : vector<16x16x128xf32>
    %cst_12 = arith.constant dense<0.000000e+00> : vector<16x128xf32>
    %38 = vector.multi_reduction <add>, %37, %cst_12 [1] : vector<16x16x128xf32> to vector<16x128xf32>
    %39 = tpu.reciprocal %34 {approx = true} : vector<16x128xf32> -> vector<16x128xf32>
    %40 = arith.mulf %38, %39 : vector<16x128xf32>
    %c0_13 = arith.constant 0 : index
    %c0_14 = arith.constant 0 : index
    %41 = vector.load %arg4[%c0_13, %c0_14] : memref<16x128xf32, #tpu.memory_space<vmem>>, vector<16x128xf32>
    tpu.vector_store %arg4[%c0_13, %c0_14], %40 {strides = array<i32>} : memref<16x128xf32, #tpu.memory_space<vmem>>, vector<16x128xf32>,
    return
  }
  func.func @transform_0(%arg0: i32) -> (i32, i32) {
    %c0_i32 = arith.constant 0 : i32
    %c0_i32_0 = arith.constant 0 : i32
    return %arg0, %c0_i32 : i32, i32
  }
  func.func @transform_1(%arg0: i32) -> (i32, i32) {
    %c0_i32 = arith.constant 0 : i32
    %c0_i32_0 = arith.constant 0 : i32
    return %arg0, %c0_i32 : i32, i32
  }
  func.func @transform_2(%arg0: i32) -> (i32, i32) {
    %c0_i32 = arith.constant 0 : i32
    %c0_i32_0 = arith.constant 0 : i32
    return %arg0, %c0_i32 : i32, i32
  }
  func.func @transform_3(%arg0: i32) -> (i32, i32) {
    %c0_i32 = arith.constant 0 : i32
    %c0_i32_0 = arith.constant 0 : i32
    return %c0_i32, %arg0 : i32, i32
  }
}

</mosaic_0001>

<bundles_post_ra>
// kernel: tpu_custom_call.1
= control target key start
LH: loop header
LB: loop body
LE: loop exit
PB: predicated region body
PF: predicated region fallthrough
CT: control target
= control target key end

     0   :  { %vm42_vm0 = vcmask 130048   ;;  %s3517_s0 = inlined_call_operand.vmem [shape: f32[128,16], index: 0, kind: input, shape index: {}]   ;;  %s3518_s1 = inlined_call_operand.vmem [shape: f32[128,16], index: 1, kind: input, shape index: {}]   ;;  %s3519_s2 = inlined_call_operand.vmem [shape: f32[128,16], index: 2, kind: input, shape index: {}]   ;;  %s3520_s3 = inlined_call_operand.hbm [shape: f32[16,128], index: 3, kind: output, shape index: {}]  }
   0x1   :  { %v41_v0 = vld [vmem:[%s3517_s0 + $0x78] sm:$0xff]  ;;  %v40_v1 = vld [vmem:[%s3517_s0 + $0x70] sm:$0xff]  ;;  %v39_v2 = vld [vmem:[%s3517_s0 + $0x68] sm:$0xff] }
   0x2   :  { %v95_v3 = vsel %vm42_vm0, %v41_v0, 0  ;;  %v92_v4 = vsel %vm42_vm0, %v40_v1, 0  ;;  %v89_v5 = vsel %vm42_vm0, %v39_v2, 0  ;;  %v38_v6 = vld [vmem:[%s3517_s0 + $0x60] sm:$0xff]  ;;  %v37_v7 = vld [vmem:[%s3517_s0 + $0x58] sm:$0xff]  ;;  %v36_v17 = vld [vmem:[%s3517_s0 + $0x50] sm:$0xff] }
   0x3   :  { %v2154_v8 = vand.u32 4294901760, %v95_v3  ;;  %v2156_v9 = vand.u32 4294901760, %v92_v4  ;;  %v2158_v10 = vand.u32 4294901760, %v89_v5  ;;  %v86_v11 = vsel %vm42_vm0, %v38_v6, 0 }
   0x4   :  { %v2161_v12 = vand.u32 4294901760, %v86_v11  ;;  %v83_v16 = vsel %vm42_vm0, %v37_v7, 0 }
   0x5   :  { %98 = vmatpush.xpose.msra.mxu0 %v2154_v8  ;;  %v2165_v13 = vsub.f32 %v95_v3, %v2154_v8  ;;  %311 = vmatpush.xpose.msra.mxu3 %v2154_v8  ;;  %v2169_v14 = vsub.f32 %v92_v4, %v2156_v9  ;;  %v2172_v15 = vsub.f32 %v89_v5, %v2158_v10 }
   0x6   :  { %8 = vsyncpa [#allocation3], 0  ;;  %v2181_v20 = vand.u32 4294901760, %v83_v16  ;;  %v80_v21 = vsel %vm42_vm0, %v36_v17, 0  ;;  %v2193_v24 = vsub.f32 %v86_v11, %v2161_v12  ;;  %v35_v26 = vld [vmem:[%s3517_s0 + $0x48] sm:$0xff]  ;;  %v34_v34 = vld [vmem:[%s3517_s0 + $0x40] sm:$0xff] }
   0x7   :  { %253 = vmatpush.xpose.msra.mxu2 %v2165_v13  ;;  %v148_v18 = vand.u32 4294901760, %v2165_v13  ;;  %v154_v19 = vand.u32 4294901760, %v2169_v14  ;;  %v160_v25 = vand.u32 4294901760, %v2172_v15  ;;  %v2200_v28 = vand.u32 4294901760, %v80_v21  ;;  %v33_v41 = vld [vmem:[%s3517_s0 + $0x38] sm:$0xff]  ;;  %v32_v48 = vld [vmem:[%s3517_s0 + $0x30] sm:$0xff] }
   0x8   :  { %v77_v29 = vsel %vm42_vm0, %v35_v26, 0  ;;  %v2208_v32 = vsub.f32 %v83_v16, %v2181_v20  ;;  %v166_v33 = vand.u32 4294901760, %v2193_v24  ;;  %v74_v36 = vsel %vm42_vm0, %v34_v34, 0  ;;  %v31_v54 = vld [vmem:[%s3517_s0 + $0x28] sm:$0xff]  ;;  %v30_v62 = vld [vmem:[%s3517_s0 + $0x20] sm:$0xff]  ;;  %v29_v5 = vld [vmem:[%s3517_s0 + $0x18] sm:$0xff] }
   0x9   :  { %100 = vmatpush.xpose.msra.mxu0 %v2156_v9  ;;  %v149_v22 = vsub.f32 %v2165_v13, %v148_v18  ;;  %313 = vmatpush.xpose.msra.mxu3 %v2156_v9  ;;  %v155_v23 = vsub.f32 %v2169_v14, %v154_v19  ;;  %v161_v31 = vsub.f32 %v2172_v15, %v160_v25  ;;  %v2216_v35 = vand.u32 4294901760, %v77_v29  ;;  %s1922_s25 = sshll.u32 %s3520_s3, 4  ;;  %s2114_s3 = smov 128   ;;  %s1923_s25 = int_to_ptr.hbm [resolvable:$true] %s1922_s25 }
   0xa   :  { %v167_v38 = vsub.f32 %v2193_v24, %v166_v33  ;;  %v2224_v39 = vsub.f32 %v80_v21, %v2200_v28  ;;  %v172_v40 = vand.u32 4294901760, %v2208_v32  ;;  %v2232_v42 = vand.u32 4294901760, %v74_v36  ;;  %s2115_s26 = smov 8  }
   0xb   :  { %256 = vmatpush.xpose.msra.mxu2 %v2169_v14  ;;  %v150_v27 = vand.u32 4294901760, %v149_v22  ;;  %v156_v30 = vand.u32 4294901760, %v155_v23  ;;  %v162_v37 = vand.u32 4294901760, %v161_v31  ;;  %v2239_v45 = vsub.f32 %v77_v29, %v2216_v35  ;;  %v28_v22 = vld [vmem:[%s3517_s0 + $0x10] sm:$0xff]  ;;  %v486_v31 = vld [vmem:[%s3518_s1 + $0x78] sm:$0xff] }
   0xc   :  { %v168_v43 = vand.u32 4294901760, %v167_v38  ;;  %v173_v44 = vsub.f32 %v2208_v32, %v172_v40  ;;  %v178_v46 = vand.u32 4294901760, %v2224_v39  ;;  %v71_v47 = vsel %vm42_vm0, %v33_v41, 0  ;;  %v485_v41 = vld [vmem:[%s3518_s1 + $0x70] sm:$0xff]  ;;  %v478_v14 = vld [vmem:[%s3518_s1 + $0x38] sm:$0xff] }
   0xd   :  { %102 = vmatpush.xpose.msra.mxu0 %v2158_v10  ;;  %151 = vmatpush.xpose.msra.mxu1 %v150_v27  ;;  %v2249_v49 = vsub.f32 %v74_v36, %v2232_v42  ;;  %v2255_v52 = vand.u32 4294901760, %v71_v47  ;;  %v184_v53 = vand.u32 4294901760, %v2239_v45  ;;  %v68_v55 = vsel %vm42_vm0, %v32_v48, 0  ;;  %v27_v36 = vld [vmem:[%s3517_s0 + $0x8] sm:$0xff] }
   0xe   :  { %315 = vmatpush.xpose.msra.mxu3 %v2158_v10  ;;  %v174_v50 = vand.u32 4294901760, %v173_v44  ;;  %v179_v51 = vsub.f32 %v2224_v39, %v178_v46  ;;  %v65_v57 = vsel %vm42_vm0, %v31_v54, 0  ;;  %v2273_v61 = vand.u32 4294901760, %v68_v55 }
   0xf   :  { %259 = vmatpush.xpose.msra.mxu2 %v2172_v15  ;;  %v190_v56 = vand.u32 4294901760, %v2249_v49  ;;  %v185_v59 = vsub.f32 %v2239_v45, %v184_v53  ;;  %v2271_v60 = vsub.f32 %v71_v47, %v2255_v52  ;;  %v2283_v0 = vand.u32 4294901760, %v65_v57 }
  0x10   :  { %v180_v58 = vand.u32 4294901760, %v179_v51  ;;  %v2287_v2 = vsub.f32 %v68_v55, %v2273_v61  ;;  %v62_v4 = vsel %vm42_vm0, %v30_v62, 0  ;;  %v59_v21 = vsel %vm42_vm0, %v29_v5, 0  ;;  %v26_v51 = vld [vmem:[%s3517_s0] sm:$0xff] }
  0x11   :  { %104 = vmatpush.xpose.msra.mxu0 %v2161_v12  ;;  %157 = vmatpush.xpose.msra.mxu1 %v156_v30  ;;  %v191_v63 = vsub.f32 %v2249_v49, %v190_v56  ;;  %v186_v1 = vand.u32 4294901760, %v185_v59  ;;  %v3531_v3 = vand.u32 4294901760, %v2271_v60  ;;  %v2296_v6 = vand.u32 4294901760, %v62_v4 }
  0x12   :  { %317 = vmatpush.xpose.msra.mxu3 %v2161_v12  ;;  %v2303_v16 = vsub.f32 %v65_v57, %v2283_v0  ;;  %v3528_v17 = vand.u32 4294901760, %v2287_v2  ;;  %v2319_v29 = vand.u32 4294901760, %v59_v21  ;;  %v56_v34 = vsel %vm42_vm0, %v28_v22, 0 }
  0x13   :  { %262 = vmatpush.xpose.msra.mxu2 %v2193_v24  ;;  %v192_v7 = vand.u32 4294901760, %v191_v63  ;;  %v197_v11 = vsub.f32 %v2271_v60, %v3531_v3  ;;  %v2313_v23 = vsub.f32 %v62_v4, %v2296_v6  ;;  %v533_v38 = vsel %vm42_vm0, %v486_v31, 0 }
  0x14   :  { %v203_v27 = vsub.f32 %v2287_v2, %v3528_v17  ;;  %v3526_v30 = vand.u32 4294901760, %v2303_v16  ;;  %v2341_v47 = vsub.f32 %v59_v21, %v2319_v29  ;;  %v2343_v48 = vand.u32 4294901760, %v56_v34 }
  0x15   :  { %106 = vmatpush.xpose.msra.mxu0 %v2181_v20  ;;  %163 = vmatpush.xpose.msra.mxu1 %v162_v37  ;;  %v198_v26 = vand.u32 4294901760, %v197_v11  ;;  %v3525_v37 = vand.u32 4294901760, %v2313_v23  ;;  %v2351_v54 = vand.u32 4294901760, %v533_v38  ;;  %v530_v55 = vsel %vm42_vm0, %v485_v41, 0 }
  0x16   :  { %319 = vmatpush.xpose.msra.mxu3 %v2181_v20  ;;  %v209_v44 = vsub.f32 %v2303_v16, %v3526_v30  ;;  %v2362_v62 = vsub.f32 %v56_v34, %v2343_v48  ;;  %v50_v4 = vsel %vm42_vm0, %v26_v51, 0  ;;  %v2369_v5 = vand.u32 4294901760, %v530_v55  ;;  %v483_v34 = vld [vmem:[%s3518_s1 + $0x60] sm:$0xff]  ;;  %v480_v30 = vld [vmem:[%s3518_s1 + $0x48] sm:$0xff] }
  0x17   :  { %265 = vmatpush.xpose.msra.mxu2 %v2208_v32  ;;  %v215_v57 = vsub.f32 %v2313_v23, %v3525_v37  ;;  %v515_v13 = vsel %vm42_vm0, %v480_v30, 0  ;;  %v509_v15 = vsel %vm42_vm0, %v478_v14, 0  ;;  %vm1891_vm5 = vcmask 1041409  }
  0x18   :  { %v210_v59 = vand.u32 4294901760, %v209_v44  ;;  %v3521_v31 = vand.u32 4294901760, %v2362_v62  ;;  %v2509_v14 = vand.u32 4294901760, %v509_v15  ;;  %vm1893_vm6 = vcmask 1042434  }
  0x19   :  { %108 = vmatpush.xpose.msra.mxu0 %v2200_v28  ;;  %169 = vmatpush.xpose.msra.mxu1 %v168_v43  ;;  %v204_v43 = vand.u32 4294901760, %v203_v27  ;;  %v216_v21 = vand.u32 4294901760, %v215_v57  ;;  %v2383_v27 = vand.u32 4294901760, %v50_v4  ;;  %v482_v57 = vld [vmem:[%s3518_s1 + $0x58] sm:$0xff]  ;;  %vm1895_vm7 = vcmask 1043459  }
  0x1a   :  { %321 = vmatpush.xpose.msra.mxu3 %v2200_v28  ;;  %vm1897_vm8 = vcmask 1044484   ;;  %vm1899_vm9 = vcmask 1045509   ;;  %vm1901_vm10 = vcmask 1046534   ;;  %vm1903_vm11 = vcmask 1047559  }
  0x1b   :  { %268 = vmatpush.xpose.msra.mxu2 %v2224_v39  ;;  %v2403_v51 = vsub.f32 %v50_v4, %v2383_v27 }
  0x1d   :  { %110 = vmatpush.xpose.msra.mxu0 %v2216_v35  ;;  %175 = vmatpush.xpose.msra.mxu1 %v174_v50  ;;  %v53_v50 = vsel %vm42_vm0, %v27_v36, 0  ;;  %v2391_v36 = vsub.f32 %v530_v55, %v2369_v5 }
  0x1e   :  { %323 = vmatpush.xpose.msra.mxu3 %v2216_v35  ;;  %v2364_v63 = vand.u32 4294901760, %v53_v50 }
  0x1f   :  { %271 = vmatpush.xpose.msra.mxu2 %v2239_v45 }
  0x21   :  { %112 = vmatpush.xpose.msra.mxu0 %v2232_v42  ;;  %181 = vmatpush.xpose.msra.mxu1 %v180_v58  ;;  %v484_v58 = vld [vmem:[%s3518_s1 + $0x68] sm:$0xff] }
  0x22   :  { %325 = vmatpush.xpose.msra.mxu3 %v2232_v42  ;;  %v527_v11 = vsel %vm42_vm0, %v484_v58, 0  ;;  %v3527_v58 = vand.u32 4294901760, %v2391_v36 }
  0x23   :  { %274 = vmatpush.xpose.msra.mxu2 %v2249_v49 }
  0x25   :  { %114 = vmatpush.xpose.msra.mxu0 %v2255_v52  ;;  %187 = vmatpush.xpose.msra.mxu1 %v186_v1  ;;  %v3522_v1 = vand.u32 4294901760, %v2341_v47 }
  0x26   :  { %327 = vmatpush.xpose.msra.mxu3 %v2255_v52 }
  0x27   :  { %277 = vmatpush.xpose.msra.mxu2 %v2271_v60  ;;  %v221_v22 = vsub.f32 %v2341_v47, %v3522_v1  ;;  %v481_v1 = vld [vmem:[%s3518_s1 + $0x50] sm:$0xff] }
  0x28   :  { %v518_v37 = vsel %vm42_vm0, %v481_v1, 0 }
  0x29   :  { %116 = vmatpush.xpose.msra.mxu0 %v2273_v61  ;;  %193 = vmatpush.xpose.msra.mxu1 %v192_v7  ;;  %v2373_v7 = vsub.f32 %v533_v38, %v2351_v54  ;;  %v2393_v38 = vand.u32 4294901760, %v527_v11  ;;  %v222_v44 = vand.u32 4294901760, %v221_v22  ;;  %v521_v22 = vsel %vm42_vm0, %v482_v57, 0 }
  0x2a   :  { %329 = vmatpush.xpose.msra.mxu3 %v2273_v61  ;;  %v593_v57 = vsub.f32 %v2391_v36, %v3527_v58 }
  0x2b   :  { %280 = vmatpush.xpose.msra.mxu2 %v2287_v2  ;;  %v3523_v41 = vand.u32 4294901760, %v2373_v7 }
  0x2d   :  { %118 = vmatpush.xpose.msra.mxu0 %v2283_v0  ;;  %199 = vmatpush.xpose.msra.mxu1 %v198_v26  ;;  %v2381_v26 = vsub.f32 %v53_v50, %v2364_v63  ;;  %v227_v50 = vsub.f32 %v2362_v62, %v3521_v31  ;;  %v587_v4 = vsub.f32 %v2373_v7, %v3523_v41 }
  0x2e   :  { %331 = vmatpush.xpose.msra.mxu3 %v2283_v0 }
  0x2f   :  { %283 = vmatpush.xpose.msra.mxu2 %v2303_v16  ;;  %v3524_v55 = vand.u32 4294901760, %v2381_v26 }
  0x31   :  { %120 = vmatpush.xpose.msra.mxu0 %v2296_v6  ;;  %205 = vmatpush.xpose.msra.mxu1 %v204_v43  ;;  %v524_v43 = vsel %vm42_vm0, %v483_v34, 0  ;;  %v228_v34 = vand.u32 4294901760, %v227_v50  ;;  %v233_v31 = vsub.f32 %v2381_v26, %v3524_v55  ;;  %v2438_v55 = vand.u32 4294901760, %v521_v22 }
  0x32   :  { %333 = vmatpush.xpose.msra.mxu3 %v2296_v6 }
  0x33   :  { %286 = vmatpush.xpose.msra.mxu2 %v2313_v23  ;;  %v234_v58 = vand.u32 4294901760, %v233_v31  ;;  %v2457_v31 = vsub.f32 %v521_v22, %v2438_v55 }
  0x35   :  { %122 = vmatpush.xpose.msra.mxu0 %v2319_v29  ;;  %211 = vmatpush.xpose.msra.mxu1 %v210_v59  ;;  %v2412_v59 = vsub.f32 %v527_v11, %v2393_v38  ;;  %v3530_v11 = vand.u32 4294901760, %v2403_v51  ;;  %v3534_v30 = vand.u32 4294901760, %v2457_v31 }
  0x36   :  { %335 = vmatpush.xpose.msra.mxu3 %v2319_v29 }
  0x37   :  { %289 = vmatpush.xpose.msra.mxu2 %v2341_v47  ;;  %v3529_v41 = vand.u32 4294901760, %v2412_v59  ;;  %v239_v17 = vsub.f32 %v2403_v51, %v3530_v11 }
  0x39   :  { %124 = vmatpush.xpose.msra.mxu0 %v2343_v48  ;;  %217 = vmatpush.xpose.msra.mxu1 %v216_v21  ;;  %v2418_v21 = vand.u32 4294901760, %v524_v43  ;;  %v599_v1 = vsub.f32 %v2412_v59, %v3529_v41  ;;  %v2468_v41 = vand.u32 4294901760, %v515_v13 }
  0x3a   :  { %337 = vmatpush.xpose.msra.mxu3 %v2343_v48 }
  0x3b   :  { %292 = vmatpush.xpose.msra.mxu2 %v2362_v62  ;;  %v2436_v50 = vsub.f32 %v524_v43, %v2418_v21  ;;  %v594_v43 = vand.u32 4294901760, %v593_v57  ;;  %v240_v57 = vand.u32 4294901760, %v239_v17 }
  0x3d   :  { %126 = vmatpush.xpose.msra.mxu0 %v2364_v63  ;;  %223 = vmatpush.xpose.msra.mxu1 %v222_v44  ;;  %v588_v44 = vand.u32 4294901760, %v587_v4  ;;  %v3535_v4 = vand.u32 4294901760, %v2436_v50 }
  0x3e   :  { %339 = vmatpush.xpose.msra.mxu3 %v2364_v63 }
  0x3f   :  { %295 = vmatpush.xpose.msra.mxu2 %v2381_v26  ;;  %v605_v22 = vsub.f32 %v2436_v50, %v3535_v4 }
  0x41   :  { %128 = vmatpush.xpose.msra.mxu0 %v2383_v27  ;;  %229 = vmatpush.xpose.msra.mxu1 %v228_v34  ;;  %v2459_v34 = vand.u32 4294901760, %v518_v37 }
  0x42   :  { %341 = vmatpush.xpose.msra.mxu3 %v2383_v27 }
  0x43   :  { %298 = vmatpush.xpose.msra.mxu2 %v2403_v51  ;;  %v2475_v11 = vsub.f32 %v518_v37, %v2459_v34  ;;  %v606_v37 = vand.u32 4294901760, %v605_v22 }
  0x45   :  { %358 = vmatpush.xpose.msrb.mxu0 %v148_v18  ;;  %v479_v18 = vld [vmem:[%s3518_s1 + $0x40] sm:$0xff]  ;;  %235 = vmatpush.xpose.msra.mxu1 %v234_v58  ;;  %v611_v58 = vsub.f32 %v2457_v31, %v3534_v30 }
  0x46   :  { %589 = vmatpush.xpose.msrb.mxu3 %v588_v44  ;;  %v600_v44 = vand.u32 4294901760, %v599_v1  ;;  %v512_v3 = vsel %vm42_vm0, %v479_v18, 0 }
  0x47   :  { %536 = vmatpush.xpose.msrb.mxu2 %v2351_v54  ;;  %v2488_v17 = vand.u32 4294901760, %v512_v3 }
  0x49   :  { %362 = vmatpush.xpose.msrb.mxu0 %v154_v19  ;;  %241 = vmatpush.xpose.msra.mxu1 %v240_v57  ;;  %v2486_v19 = vsub.f32 %v515_v13, %v2468_v41  ;;  %v2504_v13 = vsub.f32 %v512_v3, %v2488_v17 }
  0x4a   :  { %595 = vmatpush.xpose.msrb.mxu3 %v594_v43  ;;  %v3532_v43 = vand.u32 4294901760, %v2475_v11 }
  0x4b   :  { %538 = vmatpush.xpose.msrb.mxu2 %v2369_v5  ;;  %v3533_v1 = vand.u32 4294901760, %v2486_v19  ;;  %v3536_v3 = vand.u32 4294901760, %v2504_v13 }
  0x4c   :  { %v617_v22 = vsub.f32 %v2475_v11, %v3532_v43 }
  0x4d   :  { %366 = vmatpush.xpose.msrb.mxu0 %v160_v25  ;;  %429 = vmatpush.xpose.msrb.mxu1 %v2154_v8  ;;  %v15_v25 = vlaneseq  ;;  %v477_v8 = vld [vmem:[%s3518_s1 + $0x30] sm:$0xff] }
  0x4e   :  { %601 = vmatpush.xpose.msrb.mxu3 %v600_v44  ;;  %v612_v44 = vand.u32 4294901760, %v611_v58  ;;  %v506_v24 = vsel %vm42_vm0, %v477_v8, 0  ;;  %v2526_v8 = vsub.f32 %v509_v15, %v2509_v14 }
  0x4f   :  { %540 = vmatpush.xpose.msrb.mxu2 %v2393_v38  ;;  %v16_v18 = vshrl.u32 %v15_v25, 7  ;;  %v19_v57 = vand.u32 127, %v15_v25  ;;  %v618_v25 = vand.u32 4294901760, %v617_v22  ;;  %v2528_v43 = vand.u32 4294901760, %v506_v24 }
  0x50   :  { %v629_v22 = vsub.f32 %v2504_v13, %v3536_v3  ;;  %v3538_v30 = vand.u32 4294901760, %v2526_v8 }
  0x51   :  { %370 = vmatpush.xpose.msrb.mxu0 %v166_v33  ;;  %431 = vmatpush.xpose.msrb.mxu1 %v2156_v9  ;;  %vm20_vm1 = vcmp.eq.s32.totalorder %v16_v18, %v19_v57  ;;  %v476_v9 = vld [vmem:[%s3518_s1 + $0x28] sm:$0xff]  ;;  %v623_v33 = vsub.f32 %v2486_v19, %v3533_v1 }
  0x52   :  { %607 = vmatpush.xpose.msrb.mxu3 %v606_v37  ;;  %v2112_v37 = vmov 0.0  }
  0x53   :  { %542 = vmatpush.xpose.msrb.mxu2 %v2418_v21  ;;  %v2523_v58 = vsel %vm20_vm1, 1.0, %v2112_v37  ;;  %v624_v15 = vand.u32 4294901760, %v623_v33 }
  0x54   :  { %v44_v32 = vsel %vm42_vm0, %v2523_v58, 0  ;;  %1936 = vmatmul.msk.f32.vlgmr.msra.gmra.mxu1 %vm42_vm0, %v2523_v58 }
  0x55   :  { %374 = vmatpush.xpose.msrb.mxu0 %v172_v40  ;;  %433 = vmatpush.xpose.msrb.mxu1 %v2158_v10  ;;  %v503_v10 = vsel %vm42_vm0, %v476_v9, 0  ;;  %v475_v40 = vld [vmem:[%s3518_s1 + $0x20] sm:$0xff]  ;;  %v17_v9 = vadd.s32 8, %v16_v18  ;;  %v630_v18 = vand.u32 4294901760, %v629_v22 }
  0x56   :  { %613 = vmatpush.xpose.msrb.mxu3 %v612_v44  ;;  %v2539_v44 = vsub.f32 %v44_v32, %v44_v32  ;;  %v2552_v32 = vsub.f32 %v506_v24, %v2528_v43  ;;  %v2554_v4 = vand.u32 4294901760, %v503_v10  ;;  %v500_v39 = vsel %vm42_vm0, %v475_v40, 0 }
  0x57   :  { %544 = vmatpush.xpose.msrb.mxu2 %v2438_v55  ;;  %vm21_vm2 = vcmp.eq.s32.totalorder %v17_v9, %v19_v57  ;;  %v2568_v24 = vand.u32 4294901760, %v500_v39  ;;  %v635_v40 = vsub.f32 %v2526_v8, %v3538_v30 }
  0x58   :  { %v2548_v1 = vand.u32 4294901760, %v2539_v44  ;;  %301 = vmatmul.f32.vlgmr.msra.gmra.mxu2 %v2539_v44  ;;  %v3537_v3 = vand.u32 4294901760, %v2552_v32  ;;  %v2579_v57 = vsub.f32 %v503_v10, %v2554_v4 }
  0x59   :  { %378 = vmatpush.xpose.msrb.mxu0 %v178_v46  ;;  %435 = vmatpush.xpose.msrb.mxu1 %v2161_v12  ;;  %v474_v46 = vld [vmem:[%s3518_s1 + $0x18] sm:$0xff]  ;;  %v2597_v10 = vsub.f32 %v500_v39, %v2568_v24  ;;  %v636_v22 = vand.u32 4294901760, %v635_v40  ;;  %v3558_v39 = vand.u32 4294901760, %v2271_v60 }
  0x5a   :  { %619 = vmatpush.xpose.msrb.mxu3 %v618_v25  ;;  %v132_v12 = vsub.f32 %v2539_v44, %v2548_v1  ;;  %v2572_v25 = vsel %vm21_vm2, 1.0, %v2112_v37  ;;  %v497_v45 = vsel %vm42_vm0, %v474_v46, 0  ;;  %v473_v37 = vld [vmem:[%s3518_s1 + $0x10] sm:$0xff]  ;;  %v641_v9 = vsub.f32 %v2552_v32, %v3537_v3 }
  0x5b   :  { %546 = vmatpush.xpose.msrb.mxu2 %v2459_v34  ;;  %345 = vmatmul.f32.vlgmr.msra.gmra.mxu3 %v2548_v1  ;;  %v2606_v46 = vand.u32 4294901760, %v497_v45 }
  0x5c   :  { %v2570_v33 = vand.u32 4294901760, %v132_v12  ;;  %1937 = vmatmul.msk.f32.gmra.mxu1 %vm42_vm0, %v2572_v25  ;;  %v646_v12 = vand.u32 4294901760, %v2579_v57 }
  0x5d   :  { %382 = vmatpush.xpose.msrb.mxu0 %v184_v53  ;;  %437 = vmatpush.xpose.msrb.mxu1 %v2181_v20  ;;  %v47_v20 = vsel %vm42_vm0, %v2572_v25, 0  ;;  %v2627_v3 = vsub.f32 %v497_v45, %v2606_v46 }
  0x5e   :  { %625 = vmatpush.xpose.msrb.mxu3 %v624_v15  ;;  %134 = vmatmul.f32.vlgmr.msra.gmra.mxu0 %v2570_v33  ;;  %v2588_v53 = vsub.f32 %v47_v20, %v47_v20  ;;  %v642_v20 = vand.u32 4294901760, %v641_v9 }
  0x5f   :  { %548 = vmatpush.xpose.msrb.mxu2 %v2468_v41 }
  0x60   :  { %v2600_v15 = vand.u32 4294901760, %v2588_v53  ;;  %306 = vmatmul.f32.gmra.mxu2 %v2588_v53 }
  0x61   :  { %386 = vmatpush.xpose.msrb.mxu0 %v190_v56  ;;  %439 = vmatpush.xpose.msrb.mxu1 %v2200_v28  ;;  %v494_v28 = vsel %vm42_vm0, %v473_v37, 0  ;;  %v472_v56 = vld [vmem:[%s3518_s1 + $0x8] sm:$0xff]  ;;  %v647_v37 = vsub.f32 %v2579_v57, %v646_v12 }
  0x62   :  { %631 = vmatpush.xpose.msrb.mxu3 %v630_v18  ;;  %v140_v49 = vsub.f32 %v2588_v53, %v2600_v15  ;;  %v3539_v18 = vand.u32 4294901760, %v2597_v10  ;;  %v2629_v30 = vand.u32 4294901760, %v494_v28  ;;  %v491_v60 = vsel %vm42_vm0, %v472_v56, 0 }
  0x63   :  { %550 = vmatpush.xpose.msrb.mxu2 %v2488_v17  ;;  %351 = vmatmul.f32.gmra.mxu3 %v2600_v15  ;;  %v648_v9 = vand.u32 4294901760, %v647_v37 }
  0x64   :  { %v2621_v40 = vand.u32 4294901760, %v140_v49  ;;  %v653_v45 = vsub.f32 %v2597_v10, %v3539_v18  ;;  %v658_v49 = vand.u32 4294901760, %v2627_v3  ;;  %v2645_v56 = vsub.f32 %v494_v28, %v2629_v30 }
  0x65   :  { %390 = vmatpush.xpose.msrb.mxu0 %v3558_v39  ;;  %441 = vmatpush.xpose.msrb.mxu1 %v2216_v35  ;;  %v471_v35 = vld [vmem:[%s3518_s1] sm:$0xff]  ;;  %v2647_v39 = vand.u32 4294901760, %v491_v60 }
  0x66   :  { %637 = vmatpush.xpose.msrb.mxu3 %v636_v22  ;;  %142 = vmatmul.f32.gmra.mxu0 %v2621_v40  ;;  %v3559_v22 = vand.u32 4294901760, %v2287_v2  ;;  %v488_v2 = vsel %vm42_vm0, %v471_v35, 0  ;;  %v664_v28 = vand.u32 4294901760, %v2645_v56 }
  0x67   :  { %552 = vmatpush.xpose.msrb.mxu2 %v2509_v14  ;;  %v2659_v37 = vsub.f32 %v491_v60, %v2647_v39  ;;  %v2661_v18 = vand.u32 4294901760, %v488_v2 }
  0x68   :  { %v665_v35 = vsub.f32 %v2645_v56, %v664_v28 }
  0x69   :  { %394 = vmatpush.xpose.msrb.mxu0 %v3559_v22  ;;  %443 = vmatpush.xpose.msrb.mxu1 %v2232_v42  ;;  %v3560_v22 = vand.u32 4294901760, %v2303_v16  ;;  %v654_v42 = vand.u32 4294901760, %v653_v45  ;;  %v3561_v16 = vand.u32 4294901760, %v2313_v23  ;;  %v670_v45 = vand.u32 4294901760, %v2659_v37 }
  0x6a   :  { %643 = vmatpush.xpose.msrb.mxu3 %v642_v20  ;;  %v659_v20 = vsub.f32 %v2627_v3, %v658_v49  ;;  %v2672_v60 = vsub.f32 %v488_v2, %v2661_v18  ;;  %v3563_v2 = vand.u32 4294901760, %v2362_v62  ;;  %v3565_v62 = vand.u32 4294901760, %v2403_v51 }
  0x6b   :  { %554 = vmatpush.xpose.msrb.mxu2 %v2528_v43  ;;  %v671_v23 = vsub.f32 %v2659_v37, %v670_v45 }
  0x6d   :  { %398 = vmatpush.xpose.msrb.mxu0 %v3560_v22  ;;  %445 = vmatpush.xpose.msrb.mxu1 %v2255_v52  ;;  %v660_v52 = vand.u32 4294901760, %v659_v20  ;;  %v676_v22 = vand.u32 4294901760, %v2672_v60 }
  0x6e   :  { %649 = vmatpush.xpose.msrb.mxu3 %v648_v9  ;;  %v3562_v9 = vand.u32 4294901760, %v2341_v47  ;;  %v672_v47 = vand.u32 4294901760, %v671_v23 }
  0x6f   :  { %556 = vmatpush.xpose.msrb.mxu2 %v2554_v4 }
  0x71   :  { %402 = vmatpush.xpose.msrb.mxu0 %v3561_v16  ;;  %447 = vmatpush.xpose.msrb.mxu1 %v2273_v61  ;;  %v666_v61 = vand.u32 4294901760, %v665_v35 }
  0x72   :  { %655 = vmatpush.xpose.msrb.mxu3 %v654_v42  ;;  %v3564_v42 = vand.u32 4294901760, %v2381_v26  ;;  %v3573_v26 = vand.u32 4294901760, %v2504_v13 }
  0x73   :  { %558 = vmatpush.xpose.msrb.mxu2 %v2568_v24 }
  0x75   :  { %406 = vmatpush.xpose.msrb.mxu0 %v3562_v9  ;;  %449 = vmatpush.xpose.msrb.mxu1 %v2283_v0  ;;  %v677_v0 = vsub.f32 %v2672_v60, %v676_v22 }
  0x76   :  { %661 = vmatpush.xpose.msrb.mxu3 %v660_v52 }
  0x77   :  { %560 = vmatpush.xpose.msrb.mxu2 %v2606_v46  ;;  %v678_v20 = vand.u32 4294901760, %v677_v0  ;;  %v914_v0 = vld [vmem:[%s3519_s2 + $0x38] sm:$0xff] }
  0x79   :  { %410 = vmatpush.xpose.msrb.mxu0 %v3563_v2  ;;  %451 = vmatpush.xpose.msrb.mxu1 %v2296_v6  ;;  %v3566_v6 = vand.u32 4294901760, %v2373_v7 }
  0x7a   :  { %667 = vmatpush.xpose.msrb.mxu3 %v666_v61 }
  0x7b   :  { %562 = vmatpush.xpose.msrb.mxu2 %v2629_v30 }
  0x7d   :  { %414 = vmatpush.xpose.msrb.mxu0 %v3564_v42  ;;  %453 = vmatpush.xpose.msrb.mxu1 %v2319_v29  ;;  %v3567_v29 = vand.u32 4294901760, %v2391_v36 }
  0x7e   :  { %673 = vmatpush.xpose.msrb.mxu3 %v672_v47 }
  0x7f   :  { %564 = vmatpush.xpose.msrb.mxu2 %v2647_v39 }
  0x81   :  { %418 = vmatpush.xpose.msrb.mxu0 %v3565_v62  ;;  %455 = vmatpush.xpose.msrb.mxu1 %v2343_v48  ;;  %v3568_v48 = vand.u32 4294901760, %v2412_v59 }
  0x82   :  { %679 = vmatpush.xpose.msrb.mxu3 %v678_v20 }
  0x83   :  { %566 = vmatpush.xpose.msrb.mxu2 %v2661_v18 }
  0x84   :  { %1938 = vmatmul.msk.f32.vlgmr.msrb.gmra.mxu0 %vm42_vm0, %v2523_v58 }
  0x85   :  { %691 = vmatpush.xpose.msra.mxu0 %v2373_v7  ;;  %457 = vmatpush.xpose.msrb.mxu1 %v2364_v63  ;;  %v3570_v63 = vand.u32 4294901760, %v2457_v31  ;;  %v3572_v7 = vand.u32 4294901760, %v2486_v19 }
  0x86   :  { %867 = vmatpush.xpose.msra.mxu3 %v2351_v54  ;;  %572 = vmatmul.f32.vlgmr.msrb.gmra.mxu2 %v2570_v33 }
  0x87   :  { %796 = vmatpush.xpose.msra.mxu2 %v3566_v6  ;;  %1942 = vmatmul.msk.f32.vlgmr.msrb.gmra.mxu3 %vm42_vm0, %v2523_v58 }
  0x89   :  { %694 = vmatpush.xpose.msra.mxu0 %v2391_v36  ;;  %459 = vmatpush.xpose.msrb.mxu1 %v2383_v27  ;;  %v3574_v27 = vand.u32 4294901760, %v2526_v8  ;;  %v3575_v36 = vand.u32 4294901760, %v2552_v32 }
  0x8a   :  { %869 = vmatpush.xpose.msra.mxu3 %v2369_v5 }
  0x8b   :  { %800 = vmatpush.xpose.msra.mxu2 %v3567_v29 }
  0x8c   :  { %1940 = vmatmul.msk.f32.vlgmr.msrb.gmra.mxu1 %vm42_vm0, %v2523_v58  ;;  %1939 = vmatmul.msk.f32.gmra.mxu0 %vm42_vm0, %v2572_v25 }
  0x8d   :  { %697 = vmatpush.xpose.msra.mxu0 %v2412_v59  ;;  %749 = vmatpush.xpose.msra.mxu1 %v2351_v54  ;;  %v3569_v54 = vand.u32 4294901760, %v2436_v50 }
  0x8e   :  { %871 = vmatpush.xpose.msra.mxu3 %v2393_v38  ;;  %580 = vmatmul.f32.gmra.mxu2 %v2621_v40 }
  0x8f   :  { %804 = vmatpush.xpose.msra.mxu2 %v3568_v48  ;;  %1943 = vmatmul.msk.f32.gmra.mxu3 %vm42_vm0, %v2572_v25  ;;  %v945_v48 = vsel %vm42_vm0, %v914_v0, 0 }
  0x91   :  { %700 = vmatpush.xpose.msra.mxu0 %v2436_v50  ;;  %751 = vmatpush.xpose.msra.mxu1 %v2369_v5  ;;  %v3571_v5 = vand.u32 4294901760, %v2475_v11 }
  0x92   :  { %873 = vmatpush.xpose.msra.mxu3 %v2418_v21 }
  0x93   :  { %808 = vmatpush.xpose.msra.mxu2 %v3569_v54  ;;  %v913_v54 = vld [vmem:[%s3519_s2 + $0x30] sm:$0xff] }
  0x94   :  { %1941 = vmatmul.msk.f32.gmra.mxu1 %vm42_vm0, %v2572_v25 }
  0x95   :  { %703 = vmatpush.xpose.msra.mxu0 %v2457_v31  ;;  %753 = vmatpush.xpose.msra.mxu1 %v2393_v38  ;;  %v922_v38 = vld [vmem:[%s3519_s2 + $0x78] sm:$0xff] }
  0x96   :  { %875 = vmatpush.xpose.msra.mxu3 %v2438_v55  ;;  %v969_v51 = vsel %vm42_vm0, %v922_v38, 0  ;;  %v912_v38 = vld [vmem:[%s3519_s2 + $0x28] sm:$0xff] }
  0x97   :  { %812 = vmatpush.xpose.msra.mxu2 %v3570_v63  ;;  %v2782_v59 = vand.u32 4294901760, %v969_v51 }
  0x99   :  { %706 = vmatpush.xpose.msra.mxu0 %v2475_v11  ;;  %755 = vmatpush.xpose.msra.mxu1 %v2418_v21  ;;  %v920_v11 = vld [vmem:[%s3519_s2 + $0x68] sm:$0xff] }
  0x9a   :  { %877 = vmatpush.xpose.msra.mxu3 %v2459_v34  ;;  %v963_v31 = vsel %vm42_vm0, %v920_v11, 0 }
  0x9b   :  { %816 = vmatpush.xpose.msra.mxu2 %v3571_v5 }
  0x9d   :  { %709 = vmatpush.xpose.msra.mxu0 %v2486_v19  ;;  %757 = vmatpush.xpose.msra.mxu1 %v2438_v55  ;;  %v921_v55 = vld [vmem:[%s3519_s2 + $0x70] sm:$0xff] }
  0x9e   :  { %879 = vmatpush.xpose.msra.mxu3 %v2468_v41  ;;  %v966_v21 = vsel %vm42_vm0, %v921_v55, 0 }
  0x9f   :  { %820 = vmatpush.xpose.msra.mxu2 %v3572_v7  ;;  %v2792_v50 = vand.u32 4294901760, %v966_v21 }
  0xa1   :  { %712 = vmatpush.xpose.msra.mxu0 %v2504_v13  ;;  %759 = vmatpush.xpose.msra.mxu1 %v2459_v34  ;;  %v919_v34 = vld [vmem:[%s3519_s2 + $0x60] sm:$0xff]  ;;  %v1027_v19 = vsub.f32 %v966_v21, %v2792_v50 }
  0xa2   :  { %881 = vmatpush.xpose.msra.mxu3 %v2488_v17  ;;  %v960_v13 = vsel %vm42_vm0, %v919_v34, 0 }
  0xa3   :  { %824 = vmatpush.xpose.msra.mxu2 %v3573_v26 }
  0xa5   :  { %715 = vmatpush.xpose.msra.mxu0 %v2526_v8  ;;  %761 = vmatpush.xpose.msra.mxu1 %v2468_v41  ;;  %v3576_v41 = vand.u32 4294901760, %v2597_v10 }
  0xa6   :  { %883 = vmatpush.xpose.msra.mxu3 %v2509_v14 }
  0xa7   :  { %828 = vmatpush.xpose.msra.mxu2 %v3574_v27  ;;  %v2900_v27 = vand.u32 4294901760, %v945_v48 }
  0xa9   :  { %718 = vmatpush.xpose.msra.mxu0 %v2552_v32  ;;  %763 = vmatpush.xpose.msra.mxu1 %v2488_v17  ;;  %v2805_v17 = vand.u32 4294901760, %v963_v31  ;;  %v1069_v21 = vsub.f32 %v945_v48, %v2900_v27 }
  0xaa   :  { %885 = vmatpush.xpose.msra.mxu3 %v2528_v43 }
  0xab   :  { %832 = vmatpush.xpose.msra.mxu2 %v3575_v36  ;;  %v1033_v8 = vsub.f32 %v963_v31, %v2805_v17  ;;  %v942_v36 = vsel %vm42_vm0, %v913_v54, 0  ;;  %v911_v31 = vld [vmem:[%s3519_s2 + $0x20] sm:$0xff] }
  0xac   :  { %v2912_v11 = vand.u32 4294901760, %v942_v36  ;;  %v907_v54 = vld [vmem:[%s3519_s2] sm:$0xff] }
  0xad   :  { %721 = vmatpush.xpose.msra.mxu0 %v2579_v57  ;;  %765 = vmatpush.xpose.msra.mxu1 %v2509_v14  ;;  %v918_v14 = vld [vmem:[%s3519_s2 + $0x58] sm:$0xff] }
  0xae   :  { %887 = vmatpush.xpose.msra.mxu3 %v2554_v4  ;;  %v957_v57 = vsel %vm42_vm0, %v918_v14, 0  ;;  %v1075_v14 = vsub.f32 %v942_v36, %v2912_v11 }
  0xaf   :  { %836 = vmatpush.xpose.msra.mxu2 %v646_v12 }
  0xb1   :  { %724 = vmatpush.xpose.msra.mxu0 %v2597_v10  ;;  %767 = vmatpush.xpose.msra.mxu1 %v2528_v43  ;;  %v2837_v10 = vand.u32 4294901760, %v1033_v8 }
  0xb2   :  { %889 = vmatpush.xpose.msra.mxu3 %v2568_v24 }
  0xb3   :  { %840 = vmatpush.xpose.msra.mxu2 %v3576_v41  ;;  %v1035_v16 = vsub.f32 %v1033_v8, %v2837_v10 }
  0xb5   :  { %727 = vmatpush.xpose.msra.mxu0 %v2627_v3  ;;  %769 = vmatpush.xpose.msra.mxu1 %v2554_v4  ;;  %v1021_v4 = vsub.f32 %v969_v51, %v2782_v59  ;;  %v2818_v3 = vand.u32 4294901760, %v1027_v19  ;;  %v1036_v9 = vand.u32 4294901760, %v1035_v16 }
  0xb6   :  { %891 = vmatpush.xpose.msra.mxu3 %v2606_v46 }
  0xb7   :  { %844 = vmatpush.xpose.msra.mxu2 %v658_v49  ;;  %v2808_v43 = vand.u32 4294901760, %v1021_v4  ;;  %v1029_v12 = vsub.f32 %v1027_v19, %v2818_v3 }
  0xb9   :  { %730 = vmatpush.xpose.msra.mxu0 %v2645_v56  ;;  %771 = vmatpush.xpose.msra.mxu1 %v2568_v24  ;;  %v1023_v32 = vsub.f32 %v1021_v4, %v2808_v43  ;;  %v2824_v24 = vand.u32 4294901760, %v960_v13  ;;  %v2844_v56 = vand.u32 4294901760, %v957_v57 }
  0xba   :  { %893 = vmatpush.xpose.msra.mxu3 %v2629_v30 }
  0xbb   :  { %848 = vmatpush.xpose.msra.mxu2 %v664_v28  ;;  %v1039_v49 = vsub.f32 %v960_v13, %v2824_v24  ;;  %v916_v28 = vld [vmem:[%s3519_s2 + $0x48] sm:$0xff]  ;;  %v1045_v35 = vsub.f32 %v957_v57, %v2844_v56  ;;  %v2921_v13 = vand.u32 4294901760, %v1069_v21  ;;  %v910_v57 = vld [vmem:[%s3519_s2 + $0x18] sm:$0xff] }
  0xbd   :  { %733 = vmatpush.xpose.msra.mxu0 %v2659_v37  ;;  %773 = vmatpush.xpose.msra.mxu1 %v2606_v46  ;;  %v1024_v46 = vand.u32 4294901760, %v1023_v32  ;;  %v1030_v37 = vand.u32 4294901760, %v1029_v12  ;;  %v2854_v52 = vand.u32 4294901760, %v1039_v49  ;;  %v2871_v23 = vand.u32 4294901760, %v1045_v35 }
  0xbe   :  { %895 = vmatpush.xpose.msra.mxu3 %v2647_v39  ;;  %v936_v32 = vsel %vm42_vm0, %v911_v31, 0 }
  0xbf   :  { %852 = vmatpush.xpose.msra.mxu2 %v670_v45  ;;  %v1047_v29 = vsub.f32 %v1045_v35, %v2871_v23 }
  0xc1   :  { %736 = vmatpush.xpose.msra.mxu0 %v2672_v60  ;;  %775 = vmatpush.xpose.msra.mxu1 %v2629_v30  ;;  %v917_v30 = vld [vmem:[%s3519_s2 + $0x50] sm:$0xff]  ;;  %v951_v60 = vsel %vm42_vm0, %v916_v28, 0  ;;  %v1048_v7 = vand.u32 4294901760, %v1047_v29  ;;  %v933_v28 = vsel %vm42_vm0, %v910_v57, 0 }
  0xc2   :  { %897 = vmatpush.xpose.msra.mxu3 %v2661_v18  ;;  %v2868_v61 = vand.u32 4294901760, %v951_v60 }
  0xc3   :  { %856 = vmatpush.xpose.msra.mxu2 %v676_v22  ;;  %v1041_v22 = vsub.f32 %v1039_v49, %v2854_v52 }
  0xc4   :  { %739 = vmatmul.f32.vlgmr.msra.gmra.mxu0 %v2539_v44  ;;  %v1057_v42 = vsub.f32 %v951_v60, %v2868_v61 }
  0xc5   :  { %972 = vmatpush.xpose.msrb.mxu0 %v2782_v59  ;;  %777 = vmatpush.xpose.msra.mxu1 %v2647_v39  ;;  %v954_v39 = vsel %vm42_vm0, %v917_v30, 0  ;;  %v1042_v62 = vand.u32 4294901760, %v1041_v22  ;;  %v2931_v30 = vand.u32 4294901760, %v936_v32 }
  0xc6   :  { %1185 = vmatpush.xpose.msrb.mxu3 %v2782_v59  ;;  %1944 = vmatmul.msk.f32.vlgmr.msra.gmra.mxu2 %vm42_vm0, %v2523_v58  ;;  %v2857_v45 = vand.u32 4294901760, %v954_v39  ;;  %v2895_v63 = vand.u32 4294901760, %v1057_v42 }
  0xc7   :  { %1127 = vmatpush.xpose.msrb.mxu2 %v1021_v4  ;;  %1946 = vmatmul.msk.f32.vlgmr.msra.gmra.mxu3 %vm42_vm0, %v2523_v58  ;;  %v939_v4 = vsel %vm42_vm0, %v912_v38, 0  ;;  %v1087_v16 = vsub.f32 %v936_v32, %v2931_v30 }
  0xc8   :  { %v1051_v2 = vsub.f32 %v954_v39, %v2857_v45  ;;  %v1059_v51 = vsub.f32 %v1057_v42, %v2895_v63 }
  0xc9   :  { %974 = vmatpush.xpose.msrb.mxu0 %v2792_v50  ;;  %779 = vmatpush.xpose.msra.mxu1 %v2661_v18  ;;  %v915_v18 = vld [vmem:[%s3519_s2 + $0x40] sm:$0xff] }
  0xca   :  { %1187 = vmatpush.xpose.msrb.mxu3 %v2792_v50  ;;  %v948_v47 = vsel %vm42_vm0, %v915_v18, 0  ;;  %v2886_v6 = vand.u32 4294901760, %v1051_v2  ;;  %v1060_v34 = vand.u32 4294901760, %v1059_v51  ;;  %v924_v51 = vsel %vm42_vm0, %v907_v54, 0 }
  0xcb   :  { %1130 = vmatpush.xpose.msrb.mxu2 %v1027_v19  ;;  %v2883_v20 = vand.u32 4294901760, %v948_v47 }
  0xcc   :  { %783 = vmatmul.f32.vlgmr.msra.gmra.mxu1 %v2548_v1  ;;  %744 = vmatmul.f32.gmra.mxu0 %v2588_v53  ;;  %v1053_v26 = vsub.f32 %v1051_v2, %v2886_v6 }
  0xcd   :  { %976 = vmatpush.xpose.msrb.mxu0 %v2805_v17  ;;  %1025 = vmatpush.xpose.msrb.mxu1 %v1024_v46  ;;  %v1063_v5 = vsub.f32 %v948_v47, %v2883_v20  ;;  %v2934_v46 = vand.u32 4294901760, %v1075_v14  ;;  %v2955_v47 = vand.u32 4294901760, %v1087_v16 }
  0xce   :  { %1189 = vmatpush.xpose.msrb.mxu3 %v2805_v17  ;;  %1945 = vmatmul.msk.f32.gmra.mxu2 %vm42_vm0, %v2572_v25  ;;  %v1054_v55 = vand.u32 4294901760, %v1053_v26 }
  0xcf   :  { %1133 = vmatpush.xpose.msrb.mxu2 %v1033_v8  ;;  %1947 = vmatmul.msk.f32.gmra.mxu3 %vm42_vm0, %v2572_v25  ;;  %v2907_v41 = vand.u32 4294901760, %v1063_v5  ;;  %v2924_v8 = vand.u32 4294901760, %v939_v4  ;;  %v1077_v18 = vsub.f32 %v1075_v14, %v2934_v46 }
  0xd1   :  { %978 = vmatpush.xpose.msrb.mxu0 %v2824_v24  ;;  %1031 = vmatpush.xpose.msrb.mxu1 %v1030_v37  ;;  %v1065_v19 = vsub.f32 %v1063_v5, %v2907_v41  ;;  %v1081_v39 = vsub.f32 %v939_v4, %v2924_v8  ;;  %v909_v37 = vld [vmem:[%s3519_s2 + $0x10] sm:$0xff]  ;;  %v1078_v0 = vand.u32 4294901760, %v1077_v18 }
  0xd2   :  { %1191 = vmatpush.xpose.msrb.mxu3 %v2824_v24  ;;  %v930_v22 = vsel %vm42_vm0, %v909_v37, 0 }
  0xd3   :  { %1136 = vmatpush.xpose.msrb.mxu2 %v1039_v49  ;;  %v1066_v12 = vand.u32 4294901760, %v1065_v19  ;;  %v1071_v49 = vsub.f32 %v1069_v21, %v2921_v13  ;;  %v2945_v60 = vand.u32 4294901760, %v1081_v39  ;;  %v2960_v29 = vand.u32 4294901760, %v930_v22 }
  0xd4   :  { %789 = vmatmul.f32.gmra.mxu1 %v2600_v15 }
  0xd5   :  { %980 = vmatpush.xpose.msrb.mxu0 %v2844_v56  ;;  %1037 = vmatpush.xpose.msrb.mxu1 %v1036_v9  ;;  %v2948_v9 = vand.u32 4294901760, %v933_v28  ;;  %v1099_v36 = vsub.f32 %v930_v22, %v2960_v29 }
  0xd6   :  { %1193 = vmatpush.xpose.msrb.mxu3 %v2844_v56 }
  0xd7   :  { %1139 = vmatpush.xpose.msrb.mxu2 %v1045_v35  ;;  %v1072_v35 = vand.u32 4294901760, %v1071_v49 }
  0xd9   :  { %982 = vmatpush.xpose.msrb.mxu0 %v2857_v45  ;;  %1043 = vmatpush.xpose.msrb.mxu1 %v1042_v62  ;;  %v1093_v62 = vsub.f32 %v933_v28, %v2948_v9 }
  0xda   :  { %1195 = vmatpush.xpose.msrb.mxu3 %v2857_v45 }
  0xdb   :  { %1142 = vmatpush.xpose.msrb.mxu2 %v1051_v2  ;;  %v908_v2 = vld [vmem:[%s3519_s2 + $0x8] sm:$0xff]  ;;  %v2969_v26 = vand.u32 4294901760, %v1093_v62  ;;  %s2113_s2 = smov [#allocation2]  }
  0xdc   :  { %v927_v48 = vsel %vm42_vm0, %v908_v2, 0  ;;  %s1920_s0 = sshll.u32 %s2113_s2, 4  ;;  %s1921_s0 = int_to_ptr.vmem [resolvable:$true] %s1920_s0 }
  0xdd   :  { %984 = vmatpush.xpose.msrb.mxu0 %v2868_v61  ;;  %1049 = vmatpush.xpose.msrb.mxu1 %v1048_v7  ;;  %v2972_v38 = vand.u32 4294901760, %v927_v48  ;;  %v1095_v4 = vsub.f32 %v1093_v62, %v2969_v26 }
  0xde   :  { %1197 = vmatpush.xpose.msrb.mxu3 %v2868_v61 }
  0xdf   :  { %1145 = vmatpush.xpose.msrb.mxu2 %v1057_v42  ;;  %v1083_v42 = vsub.f32 %v1081_v39, %v2945_v60  ;;  %v1105_v31 = vsub.f32 %v927_v48, %v2972_v38  ;;  %v1096_v19 = vand.u32 4294901760, %v1095_v4 }
  0xe1   :  { %986 = vmatpush.xpose.msrb.mxu0 %v2883_v20  ;;  %1055 = vmatpush.xpose.msrb.mxu1 %v1054_v55  ;;  %v1084_v7 = vand.u32 4294901760, %v1083_v42 }
  0xe2   :  { %1199 = vmatpush.xpose.msrb.mxu3 %v2883_v20 }
  0xe3   :  { %1148 = vmatpush.xpose.msrb.mxu2 %v1063_v5  ;;  %v1089_v5 = vsub.f32 %v1087_v16, %v2955_v47 }
  0xe5   :  { %988 = vmatpush.xpose.msrb.mxu0 %v2900_v27  ;;  %1061 = vmatpush.xpose.msrb.mxu1 %v1060_v34  ;;  %v1090_v55 = vand.u32 4294901760, %v1089_v5  ;;  %v2981_v34 = vand.u32 4294901760, %v924_v51 }
  0xe6   :  { %1201 = vmatpush.xpose.msrb.mxu3 %v2900_v27 }
  0xe7   :  { %1151 = vmatpush.xpose.msrb.mxu2 %v1069_v21  ;;  %v2977_v21 = vand.u32 4294901760, %v1099_v36  ;;  %v1111_v57 = vsub.f32 %v924_v51, %v2981_v34 }
  0xe9   :  { %990 = vmatpush.xpose.msrb.mxu0 %v2912_v11  ;;  %1067 = vmatpush.xpose.msrb.mxu1 %v1066_v12  ;;  %v1101_v32 = vsub.f32 %v1099_v36, %v2977_v21  ;;  %v2991_v49 = vand.u32 4294901760, %v1111_v57 }
  0xea   :  { %1203 = vmatpush.xpose.msrb.mxu3 %v2912_v11 }
  0xeb   :  { %1154 = vmatpush.xpose.msrb.mxu2 %v1075_v14  ;;  %v2985_v14 = vand.u32 4294901760, %v1105_v31  ;;  %v1102_v12 = vand.u32 4294901760, %v1101_v32  ;;  %v1113_v37 = vsub.f32 %v1111_v57, %v2991_v49 }
  0xed   :  { %992 = vmatpush.xpose.msrb.mxu0 %v2924_v8  ;;  %1073 = vmatpush.xpose.msrb.mxu1 %v1072_v35 }
  0xee   :  { %1205 = vmatpush.xpose.msrb.mxu3 %v2924_v8 }
  0xef   :  { %1157 = vmatpush.xpose.msrb.mxu2 %v1081_v39  ;;  %v1107_v39 = vsub.f32 %v1105_v31, %v2985_v14 }
  0xf1   :  { %994 = vmatpush.xpose.msrb.mxu0 %v2931_v30  ;;  %1079 = vmatpush.xpose.msrb.mxu1 %v1078_v0  ;;  %v1108_v28 = vand.u32 4294901760, %v1107_v39 }
  0xf2   :  { %1207 = vmatpush.xpose.msrb.mxu3 %v2931_v30 }
  0xf3   :  { %1160 = vmatpush.xpose.msrb.mxu2 %v1087_v16  ;;  %v1114_v16 = vand.u32 4294901760, %v1113_v37 }
  0xf5   :  { %996 = vmatpush.xpose.msrb.mxu0 %v2948_v9  ;;  %1085 = vmatpush.xpose.msrb.mxu1 %v1084_v7 }
  0xf6   :  { %1209 = vmatpush.xpose.msrb.mxu3 %v2948_v9 }
  0xf7   :  { %1163 = vmatpush.xpose.msrb.mxu2 %v1093_v62 }
  0xf9   :  { %998 = vmatpush.xpose.msrb.mxu0 %v2960_v29  ;;  %1091 = vmatpush.xpose.msrb.mxu1 %v1090_v55 }
  0xfa   :  { %1211 = vmatpush.xpose.msrb.mxu3 %v2960_v29 }
  0xfb   :  { %1166 = vmatpush.xpose.msrb.mxu2 %v1099_v36 }
  0xfd   :  { %1000 = vmatpush.xpose.msrb.mxu0 %v2972_v38  ;;  %1097 = vmatpush.xpose.msrb.mxu1 %v1096_v19 }
  0xfe   :  { %1213 = vmatpush.xpose.msrb.mxu3 %v2972_v38 }
  0xff   :  { %1169 = vmatpush.xpose.msrb.mxu2 %v1105_v31 }
 0x101   :  { %1002 = vmatpush.xpose.msrb.mxu0 %v2981_v34  ;;  %1103 = vmatpush.xpose.msrb.mxu1 %v1102_v12 }
 0x102   :  { %1215 = vmatpush.xpose.msrb.mxu3 %v2981_v34 }
 0x103   :  { %1172 = vmatpush.xpose.msrb.mxu2 %v1111_v57 }
 0x104   :  { %1008 = vmatmul.f32.vlgmr.msrb.gmra.mxu0 %v2570_v33  ;;  %v3046_v33 = vpop.f32.mrf.mxu1 }
 0x105   :  { %1232 = vmatpush.xpose.msra.mxu0 %v2808_v43  ;;  %1109 = vmatpush.xpose.msrb.mxu1 %v1108_v28 }
 0x106   :  { %1970 = vmatpush.xpose.msra.mxu3 %v2782_v59  ;;  %1175 = vmatmul.f32.vlgmr.msrb.gmra.mxu2 %v2539_v44  ;;  %v3044_v44 = vpop.f32.mrf.mxu3 }
 0x107   :  { %1954 = vmatpush.xpose.msra.mxu2 %v2808_v43  ;;  %1219 = vmatmul.f32.vlgmr.msrb.gmra.mxu3 %v2548_v1  ;;  %v3034_v1 = vpop.f32.mrf.mxu0 }
 0x109   :  { %1236 = vmatpush.xpose.msra.mxu0 %v2818_v3  ;;  %1115 = vmatpush.xpose.msrb.mxu1 %v1114_v16 }
 0x10a   :  { %1971 = vmatpush.xpose.msra.mxu3 %v2792_v50 }
 0x10b   :  { %1955 = vmatpush.xpose.msra.mxu2 %v2818_v3 }
 0x10c   :  { %1948 = vmatmul.msk.f32.vlgmr.msrb.gmra.mxu1 %vm42_vm0, %v2523_v58  ;;  %1016 = vmatmul.f32.gmra.mxu0 %v2621_v40 }
 0x10d   :  { %1240 = vmatpush.xpose.msra.mxu0 %v2837_v10  ;;  %1303 = vmatpush.xpose.msra.mxu1 %v2782_v59 }
 0x10e   :  { %1972 = vmatpush.xpose.msra.mxu3 %v2805_v17  ;;  %1180 = vmatmul.f32.gmra.mxu2 %v2588_v53  ;;  %v3048_v53 = vpop.f32.mrf.mxu2  ;;  %v3058_v40 = vpop.f32.mrf.mxu3 }
 0x10f   :  { %1956 = vmatpush.xpose.msra.mxu2 %v2837_v10  ;;  %1225 = vmatmul.f32.gmra.mxu3 %v2600_v15  ;;  %v143_v15 = vpop.f32.mrf.mxu0 }
 0x111   :  { %1244 = vmatpush.xpose.msra.mxu0 %v2854_v52  ;;  %1305 = vmatpush.xpose.msra.mxu1 %v2792_v50  ;;  %v248_v50 = vpop.f32.mrf.mxu1 }
 0x112   :  { %1973 = vmatpush.xpose.msra.mxu3 %v2824_v24  ;;  %v249_v2 = vadd.f32 %v248_v50, %v143_v15 }
 0x113   :  { %1957 = vmatpush.xpose.msra.mxu2 %v2854_v52 }
 0x114   :  { %1949 = vmatmul.msk.f32.gmra.mxu1 %vm42_vm0, %v2572_v25 }
 0x115   :  { %1248 = vmatpush.xpose.msra.mxu0 %v2871_v23  ;;  %1307 = vmatpush.xpose.msra.mxu1 %v2805_v17 }
 0x116   :  { %1974 = vmatpush.xpose.msra.mxu3 %v2844_v56  ;;  %v307_v59 = vpop.f32.mrf.mxu2  ;;  %v682_v43 = vpop.f32.mrf.mxu3 }
 0x117   :  { %1958 = vmatpush.xpose.msra.mxu2 %v2871_v23  ;;  %v421_v17 = vpop.f32.mrf.mxu0  ;;  %v308_v48 = vadd.f32 %v307_v59, %v249_v2 }
 0x119   :  { %1252 = vmatpush.xpose.msra.mxu0 %v2886_v6  ;;  %1309 = vmatpush.xpose.msra.mxu1 %v2824_v24  ;;  %v462_v24 = vpop.f32.mrf.mxu1 }
 0x11a   :  { %1975 = vmatpush.xpose.msra.mxu3 %v2857_v45 }
 0x11b   :  { %1959 = vmatpush.xpose.msra.mxu2 %v2886_v6 }
 0x11d   :  { %1256 = vmatpush.xpose.msra.mxu0 %v2895_v63  ;;  %1311 = vmatpush.xpose.msra.mxu1 %v2844_v56 }
 0x11e   :  { %1976 = vmatpush.xpose.msra.mxu3 %v2868_v61  ;;  %v573_v3 = vpop.f32.mrf.mxu2  ;;  %v686_v56 = vpop.f32.mrf.mxu3 }
 0x11f   :  { %1960 = vmatpush.xpose.msra.mxu2 %v2895_v63  ;;  %v425_v10 = vpop.f32.mrf.mxu0  ;;  %v683_v23 = vadd.f32 %v682_v43, %v573_v3 }
 0x121   :  { %1260 = vmatpush.xpose.msra.mxu0 %v2907_v41  ;;  %1313 = vmatpush.xpose.msra.mxu1 %v2857_v45  ;;  %v466_v52 = vpop.f32.mrf.mxu1 }
 0x122   :  { %1977 = vmatpush.xpose.msra.mxu3 %v2883_v20 }
 0x123   :  { %1961 = vmatpush.xpose.msra.mxu2 %v2907_v41 }
 0x125   :  { %1264 = vmatpush.xpose.msra.mxu0 %v2921_v13  ;;  %1315 = vmatpush.xpose.msra.mxu1 %v2868_v61 }
 0x126   :  { %1978 = vmatpush.xpose.msra.mxu3 %v2900_v27  ;;  %v581_v45 = vpop.f32.mrf.mxu2 }
 0x127   :  { %1962 = vmatpush.xpose.msra.mxu2 %v2921_v13 }
 0x129   :  { %1268 = vmatpush.xpose.msra.mxu0 %v2934_v46  ;;  %1317 = vmatpush.xpose.msra.mxu1 %v2883_v20 }
 0x12a   :  { %1979 = vmatpush.xpose.msra.mxu3 %v2912_v11 }
 0x12b   :  { %1963 = vmatpush.xpose.msra.mxu2 %v2934_v46 }
 0x12d   :  { %1272 = vmatpush.xpose.msra.mxu0 %v2945_v60  ;;  %1319 = vmatpush.xpose.msra.mxu1 %v2900_v27  ;;  %v687_v27 = vadd.f32 %v686_v56, %v581_v45 }
 0x12e   :  { %1980 = vmatpush.xpose.msra.mxu3 %v2924_v8 }
 0x12f   :  { %1964 = vmatpush.xpose.msra.mxu2 %v2945_v60 }
 0x131   :  { %1276 = vmatpush.xpose.msra.mxu0 %v2955_v47  ;;  %1321 = vmatpush.xpose.msra.mxu1 %v2912_v11 }
 0x132   :  { %1981 = vmatpush.xpose.msra.mxu3 %v2931_v30 }
 0x133   :  { %1965 = vmatpush.xpose.msra.mxu2 %v2955_v47 }
 0x135   :  { %1280 = vmatpush.xpose.msra.mxu0 %v2969_v26  ;;  %1323 = vmatpush.xpose.msra.mxu1 %v2924_v8 }
 0x136   :  { %1982 = vmatpush.xpose.msra.mxu3 %v2948_v9 }
 0x137   :  { %1966 = vmatpush.xpose.msra.mxu2 %v2969_v26 }
 0x139   :  { %1284 = vmatpush.xpose.msra.mxu0 %v2977_v21  ;;  %1325 = vmatpush.xpose.msra.mxu1 %v2931_v30 }
 0x13a   :  { %1983 = vmatpush.xpose.msra.mxu3 %v2960_v29 }
 0x13b   :  { %1967 = vmatpush.xpose.msra.mxu2 %v2977_v21 }
 0x13d   :  { %1288 = vmatpush.xpose.msra.mxu0 %v2985_v14  ;;  %1327 = vmatpush.xpose.msra.mxu1 %v2948_v9  ;;  %v245_v9 = vadd.f32 %v3046_v33, %v3034_v1 }
 0x13e   :  { %1984 = vmatpush.xpose.msra.mxu3 %v2972_v38 }
 0x13f   :  { %1968 = vmatpush.xpose.msra.mxu2 %v2985_v14  ;;  %v303_v42 = vadd.f32 %v3048_v53, %v245_v9 }
 0x141   :  { %1292 = vmatpush.xpose.msra.mxu0 %v2991_v49  ;;  %1329 = vmatpush.xpose.msra.mxu1 %v2960_v29  ;;  %v740_v61 = vpop.f32.mrf.mxu0  ;;  %v347_v7 = vadd.f32 %v3044_v44, %v303_v42 }
 0x142   :  { %1985 = vmatpush.xpose.msra.mxu3 %v2981_v34  ;;  %v741_v41 = vadd.f32 %v740_v61, %v683_v23 }
 0x143   :  { %1969 = vmatpush.xpose.msra.mxu2 %v2991_v49  ;;  %v422_v51 = vadd.f32 %v421_v17, %v347_v7 }
 0x144   :  { %1950 = vmatmul.msk.f32.vlgmr.msra.gmra.mxu0 %vm42_vm0, %v2523_v58 }
 0x145   :  { %1331 = vmatpush.xpose.msra.mxu1 %v2972_v38  ;;  %1953 = vmatmul.msk.f32.vlgmr.msra.gmra.mxu3 %vm42_vm0, %v2572_v25  ;;  %v353_v38 = vadd.f32 %v3058_v40, %v308_v48  ;;  %v463_v31 = vadd.f32 %v462_v24, %v422_v51 }
 0x146   :  { %1951 = vmatmul.msk.f32.vlgmr.msra.gmra.mxu2 %vm42_vm0, %v2572_v25 }
 0x147   :  { %v426_v4 = vadd.f32 %v425_v10, %v353_v38  ;;  %v469_v32 = vmul.f32 0.25, %v463_v31 }
 0x149   :  { %1333 = vmatpush.xpose.msra.mxu1 %v2981_v34  ;;  %v784_v6 = vpop.f32.mrf.mxu1  ;;  %v859_v63 = vpop.f32.mrf.mxu2  ;;  %v467_v14 = vadd.f32 %v466_v52, %v426_v4  ;;  %vm1357_vm3 = vcmp.ge.f32.partialorder %v469_v32, 0.0  ;;  %v1365_v39 = vrot.slane %v469_v32, 1  ;;  %v1366_v28 = vrot.slane %v469_v32, 2 }
 0x14a   :  { %v900_v20 = vpop.f32.mrf.mxu3  ;;  %v745_v11 = vpop.f32.mrf.mxu0  ;;  %v785_v13 = vadd.f32 %v784_v6, %v741_v41  ;;  %v1367_v16 = vrot.slane %v469_v32, 3  ;;  %v1368_v1 = vrot.slane %v469_v32, 4  ;;  %v1369_v44 = vrot.slane %v469_v32, 5 }
 0x14b   :  { %v746_v8 = vadd.f32 %v745_v11, %v687_v27  ;;  %v3107_v49 = vmul.f32 0.25, %v467_v14  ;;  %v1379_v33 = vperm.slane %v469_v32, 0  ;;  %v1370_v15 = vrot.slane %v469_v32, 6 }
 0x14c   :  { %1952 = vmatmul.msk.f32.vlgmr.msra.gmra.mxu1 %vm42_vm0, %v2523_v58  ;;  %v860_v46 = vadd.f32 %v859_v63, %v785_v13  ;;  %v1371_v40 = vrot.slane %v469_v32, 7  ;;  %v1380_v3 = vperm.slane %v1365_v39, 0  ;;  %v1381_v52 = vperm.slane %v1366_v28, 0 }
 0x14d   :  { %v1372_v53 = vrot.slane %v3107_v49, 1  ;;  %v1373_v59 = vrot.slane %v3107_v49, 2  ;;  %v1374_v50 = vrot.slane %v3107_v49, 3  ;;  %v1375_v17 = vrot.slane %v3107_v49, 4 }
 0x14e   :  { %v3092_v22 = vadd.f32 %v900_v20, %v860_v46  ;;  %v1376_v43 = vrot.slane %v3107_v49, 5  ;;  %v1377_v10 = vrot.slane %v3107_v49, 6  ;;  %v1378_v56 = vrot.slane %v3107_v49, 7 }
 0x14f   :  { %v1382_v45 = vperm.slane %v1367_v16, 0  ;;  %v1383_v61 = vperm.slane %v1368_v1, 0  ;;  %v1384_v23 = vperm.slane %v1369_v44, 0  ;;  %v1387_v20 = vperm.slane %v3107_v49, 0 }
 0x150   :  { %v1388_v6 = vperm.slane %v1372_v53, 0  ;;  %v1385_v63 = vperm.slane %v1370_v15, 0  ;;  %v1386_v27 = vperm.slane %v1371_v40, 0  ;;  %vm1358_vm4 = vcmp.ge.f32.partialorder %v3107_v49, 0.0 }
 0x151   :  { %v790_v30 = vpop.f32.mrf.mxu1  ;;  %v863_v60 = vpop.f32.mrf.mxu2  ;;  %v1389_v41 = vperm.slane %v1373_v59, 0  ;;  %v1390_v11 = vperm.slane %v1374_v50, 0  ;;  %v3122_v13 = vperm.slane %v1375_v17, 0  ;;  %v3128_v46 = vperm.slane %v1378_v56, 0 }
 0x152   :  { %v791_v35 = vadd.f32 %v790_v30, %v746_v8  ;;  %v904_v25 = vpop.f32.mrf.mxu3  ;;  %v3124_v8 = vperm.slane %v1376_v43, 0  ;;  %v3126_v30 = vperm.slane %v1377_v10, 0  ;;  %v1417_v9 = vmul.f32 %v1382_v45, %v3092_v22 }
 0x153   :  { %v3136_v2 = vmul.f32 %v1383_v61, %v3092_v22  ;;  %v3150_v48 = vmul.f32 %v1387_v20, %v3092_v22  ;;  %v3159_v7 = vmul.f32 %v1390_v11, %v3092_v22 }
 0x154   :  { %v864_v18 = vadd.f32 %v863_v60, %v791_v35  ;;  %v1411_v35 = vmul.f32 %v1379_v33, %v3092_v22  ;;  %v3174_v4 = vmul.f32 %v3126_v30, %v3092_v22 }
 0x156   :  { %v3094_v58 = vadd.f32 %v904_v25, %v864_v18  ;;  %v1413_v25 = vmul.f32 %v1380_v3, %v3092_v22  ;;  %v1415_v18 = vmul.f32 %v1381_v52, %v3092_v22 }
 0x158   :  { %v1343_v47 = vmax.f32 %v3092_v22, %v3094_v58  ;;  %v1350_v0 = vmin.f32 %v3092_v22, %v3094_v58  ;;  %v1412_v51 = vmul.f32 %v1379_v33, %v3094_v58  ;;  %v1416_v31 = vmul.f32 %v1381_v52, %v3094_v58 }
 0x159   :  { %v1420_v39 = vmul.f32 %v1383_v61, %v3094_v58  ;;  %v1422_v28 = vmul.f32 %v1384_v23, %v3094_v58  ;;  %v3187_v53 = vmul.f32 %v1385_v63, %v3094_v58  ;;  %v3190_v15 = vmul.f32 %v1386_v27, %v3094_v58 }
 0x15a   :  { %v1344_v62 = vrot.slane %v1343_v47, 4  ;;  %v1351_v29 = vrot.slane %v1350_v0, 4  ;;  %v1428_v40 = vmul.f32 %v1387_v20, %v3094_v58  ;;  %v3202_v20 = vmul.f32 %v1389_v41, %v3094_v58 }
 0x15c   :  { %v1345_v54 = vmax.f32 %v1343_v47, %v1344_v62  ;;  %v1352_v5 = vmin.f32 %v1350_v0, %v1351_v29  ;;  %v3139_v47 = vmul.f32 %v1384_v23, %v3092_v22  ;;  %v3142_v0 = vmul.f32 %v1385_v63, %v3092_v22 }
 0x15d   :  { %v3147_v29 = vmul.f32 %v1386_v27, %v3092_v22  ;;  %v3205_v63 = vmul.f32 %v1390_v11, %v3094_v58 }
 0x15e   :  { %v1346_v26 = vrot.slane %v1345_v54, 2  ;;  %v1353_v36 = vrot.slane %v1352_v5, 2 }
 0x160   :  { %v1347_v55 = vmax.f32 %v1345_v54, %v1346_v26  ;;  %v1354_v21 = vmin.f32 %v1352_v5, %v1353_v36  ;;  %v3153_v54 = vmul.f32 %v1388_v6, %v3092_v22  ;;  %v3156_v5 = vmul.f32 %v1389_v41, %v3092_v22 }
 0x161   :  { %v3163_v26 = vmul.f32 %v3122_v13, %v3092_v22 }
 0x162   :  { %v1348_v34 = vrot.slane %v1347_v55, 1  ;;  %v1355_v19 = vrot.slane %v1354_v21, 1 }
 0x164   :  { %v3103_v57 = vmax.f32 %v1347_v55, %v1348_v34  ;;  %v3105_v12 = vmin.f32 %v1354_v21, %v1355_v19  ;;  %v1414_v55 = vmul.f32 %v1380_v3, %v3094_v58  ;;  %v3170_v21 = vmul.f32 %v3124_v8, %v3092_v22 }
 0x166   :  { %v1359_v37 = vsel %vm1357_vm3, %v3103_v57, %v3105_v12  ;;  %v1360_v16 = vsel %vm1358_vm4, %v3103_v57, %v3105_v12  ;;  %v3198_v12 = vmul.f32 %v1388_v6, %v3094_v58 }
 0x167   :  { %v3116_v24 = vmul.f32 %v1359_v37, %v469_v32  ;;  %v1418_v32 = vmul.f32 %v1382_v45, %v3094_v58  ;;  %v3195_v57 = vmul.f32 %v1360_v16, %v3107_v49 }
 0x169   :  { %v1445_v60 = vrot.slane %v3116_v24, 1  ;;  %v1446_v42 = vrot.slane %v3116_v24, 2  ;;  %v1459_v62 = vperm.slane %v3116_v24, 0  ;;  %v1447_v36 = vrot.slane %v3116_v24, 3 }
 0x16a   :  { %v1448_v34 = vrot.slane %v3116_v24, 4  ;;  %v1449_v1 = vrot.slane %v3116_v24, 5  ;;  %v1450_v50 = vrot.slane %v3116_v24, 6  ;;  %v1451_v52 = vrot.slane %v3116_v24, 7 }
 0x16b   :  { %v1460_v38 = vperm.slane %v1445_v60, 0  ;;  %v1461_v19 = vperm.slane %v1446_v42, 0  ;;  %v1491_v14 = vsub.f32 %v1411_v35, %v1459_v62  ;;  %v1492_v37 = vsub.f32 %v1412_v51, %v1459_v62 }
 0x16c   :  { %v1462_v44 = vperm.slane %v1447_v36, 0  ;;  %v1463_v17 = vperm.slane %v1448_v34, 0  ;;  %v1464_v45 = vperm.slane %v1449_v1, 0  ;;  %v1465_v49 = vperm.slane %v1450_v50, 0 }
 0x16d   :  { %v1493_v33 = vsub.f32 %v1413_v25, %v1460_v38  ;;  %v1494_v59 = vsub.f32 %v1414_v55, %v1460_v38  ;;  %v1495_v43 = vsub.f32 %v1415_v18, %v1461_v19  ;;  %v1523_v3 = vmul.f32 1.442695, %v1491_v14 }
 0x16e   :  { %v1496_v10 = vsub.f32 %v1416_v31, %v1461_v19  ;;  %v1525_v56 = vmul.f32 1.442695, %v1492_v37  ;;  %v1497_v61 = vsub.f32 %v1417_v9, %v1462_v44  ;;  %v1498_v27 = vsub.f32 %v1418_v32, %v1462_v44 }
 0x16f   :  { %v1527_v23 = vmul.f32 1.442695, %v1493_v33  ;;  %v1529_v35 = vmul.f32 1.442695, %v1494_v59  ;;  %v1499_v60 = vsub.f32 %v3136_v2, %v1463_v17  ;;  %1990 = vpow2.f32 %v1523_v3 }
 0x170   :  { %v1531_v6 = vmul.f32 1.442695, %v1495_v43  ;;  %v1452_v25 = vrot.slane %v3195_v57, 1  ;;  %v1500_v18 = vsub.f32 %v1420_v39, %v1463_v17  ;;  %1992 = vpow2.f32 %v1525_v56 }
 0x171   :  { %v1533_v24 = vmul.f32 1.442695, %v1496_v10  ;;  %v1466_v9 = vperm.slane %v1451_v52, 0  ;;  %v1501_v42 = vsub.f32 %v3139_v47, %v1464_v45  ;;  %1994 = vpow2.f32 %v1527_v23 }
 0x172   :  { %v1535_v41 = vmul.f32 1.442695, %v1497_v61  ;;  %v1453_v11 = vrot.slane %v3195_v57, 2  ;;  %v1502_v62 = vsub.f32 %v1422_v28, %v1464_v45  ;;  %1996 = vpow2.f32 %v1529_v35 }
 0x173   :  { %v1537_v36 = vmul.f32 1.442695, %v1498_v27  ;;  %v1467_v38 = vperm.slane %v3195_v57, 0  ;;  %v1503_v2 = vsub.f32 %v3142_v0, %v1465_v49  ;;  %1998 = vpow2.f32 %v1531_v6 }
 0x174   :  { %v1539_v51 = vmul.f32 1.442695, %v1499_v60  ;;  %v1454_v55 = vrot.slane %v3195_v57, 3  ;;  %v1504_v31 = vsub.f32 %v3187_v53, %v1465_v49  ;;  %2000 = vpow2.f32 %v1533_v24 }
 0x175   :  { %v1541_v34 = vmul.f32 1.442695, %v1500_v18  ;;  %v3215_v47 = vpop.eup %1990  ;;  %v1468_v19 = vperm.slane %v1452_v25, 0  ;;  %v1505_v14 = vsub.f32 %v3147_v29, %v1466_v9  ;;  %2002 = vpow2.f32 %v1535_v41 }
 0x176   :  { %v1543_v32 = vmul.f32 1.442695, %v1501_v42  ;;  %v3218_v39 = vpop.eup %1992  ;;  %v1455_v28 = vrot.slane %v3195_v57, 4  ;;  %v1506_v0 = vsub.f32 %v3190_v15, %v1466_v9  ;;  %2004 = vpow2.f32 %v1537_v36 }
 0x177   :  { %v1545_v37 = vmul.f32 1.442695, %v1502_v62  ;;  %v3222_v16 = vpop.eup %1994  ;;  %v1469_v1 = vperm.slane %v1453_v11, 0  ;;  %v1507_v44 = vsub.f32 %v3150_v48, %v1467_v38  ;;  %2006 = vpow2.f32 %v1539_v51 }
 0x178   :  { %v1547_v33 = vmul.f32 1.442695, %v1503_v2  ;;  %v3225_v53 = vpop.eup %1996  ;;  %v1456_v29 = vrot.slane %v3195_v57, 5  ;;  %v1508_v59 = vsub.f32 %v1428_v40, %v1467_v38  ;;  %2008 = vpow2.f32 %v1541_v34 }
 0x179   :  { %v1549_v50 = vmul.f32 1.442695, %v1504_v31  ;;  %v3228_v17 = vpop.eup %1998  ;;  %v1470_v43 = vperm.slane %v1454_v55, 0  ;;  %v1509_v15 = vsub.f32 %v3153_v54, %v1468_v19  ;;  %2010 = vpow2.f32 %v1543_v32 }
 0x17a   :  { %v1551_v3 = vmul.f32 1.442695, %v1505_v14  ;;  %v3231_v10 = vpop.eup %2000  ;;  %v1457_v48 = vrot.slane %v3195_v57, 6  ;;  %v1510_v56 = vsub.f32 %v3198_v12, %v1468_v19  ;;  %2012 = vpow2.f32 %v1545_v37 }
 0x17b   :  { %v1553_v52 = vmul.f32 1.442695, %v1506_v0  ;;  %v3235_v45 = vpop.eup %2002  ;;  %v1471_v40 = vperm.slane %v1455_v28, 0  ;;  %v1511_v61 = vsub.f32 %v3156_v5, %v1469_v1  ;;  %2014 = vpow2.f32 %v1547_v33 }
 0x17c   :  { %v1555_v23 = vmul.f32 1.442695, %v1507_v44  ;;  %v3238_v27 = vpop.eup %2004  ;;  %v1458_v54 = vrot.slane %v3195_v57, 7  ;;  %v1512_v35 = vsub.f32 %v3202_v20, %v1469_v1  ;;  %2016 = vpow2.f32 %v1549_v50 }
 0x17d   :  { %v1557_v49 = vmul.f32 1.442695, %v1508_v59  ;;  %v3242_v60 = vpop.eup %2006  ;;  %v1472_v12 = vperm.slane %v1456_v29, 0  ;;  %v1513_v6 = vsub.f32 %v3159_v7, %v1470_v43  ;;  %2018 = vpow2.f32 %v1551_v3 }
 0x17e   :  { %v1559_v25 = vmul.f32 1.442695, %v1509_v15  ;;  %v3245_v18 = vpop.eup %2008  ;;  %v1436_v5 = vmul.f32 %v3122_v13, %v3094_v58  ;;  %v1514_v24 = vsub.f32 %v3205_v63, %v1470_v43  ;;  %2020 = vpow2.f32 %v1553_v52 }
 0x17f   :  { %v1561_v57 = vmul.f32 1.442695, %v1510_v56  ;;  %v3250_v9 = vpop.eup %2010  ;;  %v1473_v20 = vperm.slane %v1457_v48, 0  ;;  %v1515_v42 = vsub.f32 %v3163_v26, %v1471_v40  ;;  %2022 = vpow2.f32 %v1555_v23 }
 0x180   :  { %v1563_v41 = vmul.f32 1.442695, %v1511_v61  ;;  %v3253_v11 = vpop.eup %2012  ;;  %v1438_v7 = vmul.f32 %v3124_v8, %v3094_v58  ;;  %v1516_v62 = vsub.f32 %v1436_v5, %v1471_v40  ;;  %2024 = vpow2.f32 %v1557_v49 }
 0x181   :  { %v1565_v36 = vmul.f32 1.442695, %v1512_v35  ;;  %v3257_v13 = vpop.eup %2014  ;;  %v1474_v63 = vperm.slane %v1458_v54, 0  ;;  %v1517_v38 = vsub.f32 %v3170_v21, %v1472_v12  ;;  %2026 = vpow2.f32 %v1559_v25 }
 0x182   :  { %v1567_v2 = vmul.f32 1.442695, %v1513_v6  ;;  %v3260_v51 = vpop.eup %2016  ;;  %v1440_v26 = vmul.f32 %v3126_v30, %v3094_v58  ;;  %v1518_v55 = vsub.f32 %v1438_v7, %v1472_v12  ;;  %2028 = vpow2.f32 %v1561_v57 }
 0x183   :  { %v1569_v31 = vmul.f32 1.442695, %v1514_v24  ;;  %v3264_v34 = vpop.eup %2018  ;;  %v1441_v8 = vmul.f32 %v3128_v46, %v3092_v22  ;;  %v1519_v19 = vsub.f32 %v3174_v4, %v1473_v20  ;;  %2030 = vpow2.f32 %v1563_v41  ;;  %v1009_v24 = vpop.f32.mrf.mxu0 }
 0x184   :  { %3577 = vst [vmem:[#allocation5_spill] sm:$0xff] %v3264_v34  ;;  %v1571_v14 = vmul.f32 1.442695, %v1515_v42  ;;  %v3269_v21 = vpop.eup %2020  ;;  %v1442_v32 = vmul.f32 %v3128_v46, %v3094_v58  ;;  %v1520_v28 = vsub.f32 %v1440_v26, %v1473_v20  ;;  %2032 = vpow2.f32 %v1565_v36 }
 0x185   :  { %3578 = vst [vmem:[#allocation6_spill] sm:$0xff] %v3269_v21  ;;  %v1573_v30 = vmul.f32 1.442695, %v1516_v62  ;;  %v3273_v0 = vpop.eup %2022  ;;  %v1521_v37 = vsub.f32 %v1441_v8, %v1474_v63  ;;  %2034 = vpow2.f32 %v1567_v2  ;;  %v1575_v1 = vmul.f32 1.442695, %v1517_v38 }
 0x186   :  { %3579 = vst [vmem:[#allocation7_spill] sm:$0xff] %v3273_v0  ;;  %v1587_v22 = vadd.f32 %v3218_v39, %v3215_v47  ;;  %v3277_v44 = vpop.eup %2024  ;;  %v1522_v4 = vsub.f32 %v1442_v32, %v1474_v63  ;;  %2036 = vpow2.f32 %v1569_v31  ;;  %v1577_v33 = vmul.f32 1.442695, %v1518_v55 }
 0x187   :  { %3580 = vst [vmem:[#allocation8_spill] sm:$0xff] %v3277_v44  ;;  %v3279_v29 = vpop.eup %2026  ;;  %2038 = vpow2.f32 %v1571_v14  ;;  %v1579_v58 = vmul.f32 1.442695, %v1519_v19  ;;  %v1581_v59 = vmul.f32 1.442695, %v1520_v28  ;;  %v1594_v50 = vadd.f32 %v3225_v53, %v3222_v16 }
 0x188   :  { %3581 = vst [vmem:[#allocation9_spill] sm:$0xff] %v3279_v29  ;;  %v3281_v46 = vpop.eup %2028  ;;  %2040 = vpow2.f32 %v1573_v30  ;;  %v1583_v15 = vmul.f32 1.442695, %v1521_v37  ;;  %v1588_v3 = vrot.slane %v1587_v22, 4  ;;  %v1585_v56 = vmul.f32 1.442695, %v1522_v4 }
 0x189   :  { %3582 = vst [vmem:[#allocation10_spill] sm:$0xff] %v3281_v46  ;;  %v3285_v43 = vpop.eup %2030  ;;  %2042 = vpow2.f32 %v1575_v1  ;;  %v1601_v52 = vadd.f32 %v3231_v10, %v3228_v17  ;;  %v1608_v61 = vadd.f32 %v3238_v27, %v3235_v45  ;;  %v1118_v54 = vpop.f32.mrf.mxu1  ;;  %v1595_v35 = vrot.slane %v1594_v50, 4 }
 0x18a   :  { %3583 = vst [vmem:[#allocation11_spill] sm:$0xff] %v3285_v43  ;;  %v3287_v48 = vpop.eup %2032  ;;  %2044 = vpow2.f32 %v1577_v33  ;;  %v1615_v49 = vadd.f32 %v3245_v18, %v3242_v60  ;;  %v1589_v6 = vadd.f32 %v1588_v3, %v1587_v22  ;;  %v1622_v25 = vadd.f32 %v3253_v11, %v3250_v9  ;;  %v1176_v63 = vpop.f32.mrf.mxu2 }
 0x18b   :  { %3584 = vst [vmem:[#allocation12_spill] sm:$0xff] %v3287_v48  ;;  %v3291_v40 = vpop.eup %2034  ;;  %2046 = vpow2.f32 %v1579_v58  ;;  %v1602_v57 = vrot.slane %v1601_v52, 4  ;;  %v1629_v20 = vadd.f32 %v3260_v51, %v3257_v13  ;;  %v1119_v41 = vadd.f32 %v1118_v54, %v1009_v24 }
 0x18c   :  { %3585 = vst [vmem:[#allocation13_spill] sm:$0xff] %v3291_v40  ;;  %v3295_v23 = vpop.eup %2036  ;;  %2048 = vpow2.f32 %v1581_v59  ;;  %v1609_v7 = vrot.slane %v1608_v61, 4  ;;  %v1636_v62 = vadd.f32 %v3269_v21, %v3264_v34  ;;  %v1596_v38 = vadd.f32 %v1595_v35, %v1594_v50 }
 0x18d   :  { %3586 = vst [vmem:[#allocation14_spill] sm:$0xff] %v3295_v23  ;;  %v3299_v12 = vpop.eup %2038  ;;  %2050 = vpow2.f32 %v1583_v15  ;;  %v1616_v2 = vrot.slane %v1615_v49, 4  ;;  %v1643_v26 = vadd.f32 %v3277_v44, %v3273_v0  ;;  %v1590_v31 = vrot.slane %v1589_v6, 2 }
 0x18e   :  { %3587 = vst [vmem:[#allocation15_spill] sm:$0xff] %v3299_v12  ;;  %v3303_v5 = vpop.eup %2040  ;;  %2052 = vpow2.f32 %v1585_v56  ;;  %v1623_v8 = vrot.slane %v1622_v25, 4  ;;  %v1650_v19 = vadd.f32 %v3281_v46, %v3279_v29  ;;  %v1603_v32 = vadd.f32 %v1602_v57, %v1601_v52 }
 0x18f   :  { %3588 = vst [vmem:[#allocation16_spill] sm:$0xff] %v3303_v5  ;;  %v3307_v42 = vpop.eup %2042  ;;  %v1630_v28 = vrot.slane %v1629_v20, 4  ;;  %v1657_v30 = vadd.f32 %v3287_v48, %v3285_v43  ;;  %v3325_v1 = vadd.f32 %v1176_v63, %v1119_v41  ;;  %v1610_v22 = vadd.f32 %v1609_v7, %v1608_v61 }
 0x190   :  { %3589 = vst [vmem:[#allocation17_spill] sm:$0xff] %v3307_v42  ;;  %v3311_v36 = vpop.eup %2044  ;;  %v1637_v4 = vrot.slane %v1636_v62, 4  ;;  %v1664_v33 = vadd.f32 %v3295_v23, %v3291_v40  ;;  %v1597_v59 = vrot.slane %v1596_v38, 2  ;;  %v1617_v50 = vadd.f32 %v1616_v2, %v1615_v49 }
 0x191   :  { %3590 = vst [vmem:[#allocation18_spill] sm:$0xff] %v3311_v36  ;;  %v3315_v55 = vpop.eup %2046  ;;  %v1644_v15 = vrot.slane %v1643_v26, 4  ;;  %v1671_v3 = vadd.f32 %v3303_v5, %v3299_v12  ;;  %v1591_v56 = vadd.f32 %v1590_v31, %v1589_v6  ;;  %v1624_v52 = vadd.f32 %v1623_v8, %v1622_v25  ;;  %v3339_v31 = vpop.f32.mrf.mxu3 }
 0x192   :  { %3591 = vst [vmem:[#allocation19_spill] sm:$0xff] %v3315_v55  ;;  %v3319_v14 = vpop.eup %2048  ;;  %v1651_v54 = vrot.slane %v1650_v19, 4  ;;  %v1678_v35 = vadd.f32 %v3311_v36, %v3307_v42  ;;  %v1604_v24 = vrot.slane %v1603_v32, 2  ;;  %v1631_v61 = vadd.f32 %v1630_v28, %v1629_v20  ;;  %v1122_v28 = vpop.f32.mrf.mxu1 }
 0x193   :  { %3592 = vst [vmem:[#allocation20_spill] sm:$0xff] %v3319_v14  ;;  %v3323_v37 = vpop.eup %2050  ;;  %v1658_v57 = vrot.slane %v1657_v30, 4  ;;  %v1685_v41 = vadd.f32 %v3319_v14, %v3315_v55  ;;  %v1611_v7 = vrot.slane %v1610_v22, 2  ;;  %v1638_v63 = vadd.f32 %v1637_v4, %v1636_v62 }
 0x194   :  { %3593 = vst [vmem:[#allocation21_spill] sm:$0xff] %v3323_v37  ;;  %v3329_v58 = vpop.eup %2052  ;;  %v1665_v23 = vrot.slane %v1664_v33, 4  ;;  %v1598_v2 = vadd.f32 %v1597_v59, %v1596_v38  ;;  %v1618_v5 = vrot.slane %v1617_v50, 2  ;;  %v1645_v6 = vadd.f32 %v1644_v15, %v1643_v26 }
 0x195   :  { %3594 = vst [vmem:[#allocation22_spill] sm:$0xff] %v3329_v58  ;;  %v1692_v49 = vadd.f32 %v3329_v58, %v3323_v37  ;;  %v1672_v25 = vrot.slane %v1671_v3, 4  ;;  %v1592_v8 = vrot.slane %v1591_v56, 1  ;;  %v1625_v36 = vrot.slane %v1624_v52, 2  ;;  %v1017_v58 = vpop.f32.mrf.mxu0 }
 0x196   :  { %v1652_v42 = vadd.f32 %v1651_v54, %v1650_v19  ;;  %v1679_v20 = vrot.slane %v1678_v35, 4  ;;  %v1605_v12 = vadd.f32 %v1604_v24, %v1603_v32  ;;  %v1632_v40 = vrot.slane %v1631_v61, 2 }
 0x197   :  { %v1659_v14 = vadd.f32 %v1658_v57, %v1657_v30  ;;  %v1686_v55 = vrot.slane %v1685_v41, 4  ;;  %v1612_v62 = vadd.f32 %v1611_v7, %v1610_v22  ;;  %v1639_v4 = vrot.slane %v1638_v63, 2 }
 0x198   :  { %v1666_v48 = vadd.f32 %v1665_v23, %v1664_v33  ;;  %v1693_v43 = vrot.slane %v1692_v49, 4  ;;  %v1599_v38 = vrot.slane %v1598_v2, 1  ;;  %v1619_v59 = vadd.f32 %v1618_v5, %v1617_v50 }
 0x199   :  { %v1646_v26 = vrot.slane %v1645_v6, 2  ;;  %v1673_v15 = vadd.f32 %v1672_v25, %v1671_v3  ;;  %v1123_v37 = vadd.f32 %v1122_v28, %v1017_v58  ;;  %v1626_v46 = vadd.f32 %v1625_v36, %v1624_v52  ;;  %v1226_v25 = vpop.f32.mrf.mxu3 }
 0x19a   :  { %v1653_v29 = vrot.slane %v1652_v42, 2  ;;  %v1680_v44 = vadd.f32 %v1679_v20, %v1678_v35  ;;  %v1606_v19 = vrot.slane %v1605_v12, 1  ;;  %v1633_v54 = vadd.f32 %v1632_v40, %v1631_v61 }
 0x19b   :  { %v1660_v0 = vrot.slane %v1659_v14, 2  ;;  %v1687_v32 = vadd.f32 %v1686_v55, %v1685_v41  ;;  %v1613_v24 = vrot.slane %v1612_v62, 1  ;;  %v1640_v30 = vadd.f32 %v1639_v4, %v1638_v63  ;;  %v1181_v63 = vpop.f32.mrf.mxu2 }
 0x19c   :  { %v1667_v57 = vrot.slane %v1666_v48, 2  ;;  %v1694_v22 = vadd.f32 %v1693_v43, %v1692_v49  ;;  %v1593_v7 = vadd.f32 %v1592_v8, %v1591_v56  ;;  %v1620_v23 = vrot.slane %v1619_v59, 1 }
 0x19d   :  { %v1647_v33 = vadd.f32 %v1646_v26, %v1645_v6  ;;  %v1674_v21 = vrot.slane %v1673_v15, 2  ;;  %v1600_v34 = vadd.f32 %v1599_v38, %v1598_v2  ;;  %v1627_v5 = vrot.slane %v1626_v46, 1 }
 0x19e   :  { %v1654_v50 = vadd.f32 %v1653_v29, %v1652_v42  ;;  %v1681_v3 = vrot.slane %v1680_v44, 2  ;;  %v1607_v58 = vadd.f32 %v1606_v19, %v1605_v12  ;;  %v1634_v36 = vrot.slane %v1633_v54, 1 }
 0x19f   :  { %v1661_v52 = vadd.f32 %v1660_v0, %v1659_v14  ;;  %v1688_v35 = vrot.slane %v1687_v32, 2  ;;  %v1614_v40 = vadd.f32 %v1613_v24, %v1612_v62  ;;  %v1641_v61 = vrot.slane %v1640_v30, 1 }
 0x1a0   :  { %v1668_v55 = vadd.f32 %v1667_v57, %v1666_v48  ;;  %v1695_v41 = vrot.slane %v1694_v22, 2  ;;  %v1621_v20 = vadd.f32 %v1620_v23, %v1619_v59  ;;  %v1648_v43 = vrot.slane %v1647_v33, 1 }
 0x1a1   :  { %v1675_v56 = vadd.f32 %v1674_v21, %v1673_v15  ;;  %2054 = vrcp.f32 %v1593_v7  ;;  %v1628_v49 = vadd.f32 %v1627_v5, %v1626_v46  ;;  %v1655_v6 = vrot.slane %v1654_v50, 1 }
 0x1a2   :  { %v1682_v2 = vadd.f32 %v1681_v3, %v1680_v44  ;;  %2056 = vrcp.f32 %v1600_v34  ;;  %v1635_v29 = vadd.f32 %v1634_v36, %v1633_v54  ;;  %v1662_v42 = vrot.slane %v1661_v52, 1 }
 0x1a3   :  { %v1689_v12 = vadd.f32 %v1688_v35, %v1687_v32  ;;  %2058 = vrcp.f32 %v1607_v58  ;;  %v1642_v0 = vadd.f32 %v1641_v61, %v1640_v30  ;;  %v1669_v14 = vrot.slane %v1668_v55, 1 }
 0x1a4   :  { %v1696_v8 = vadd.f32 %v1695_v41, %v1694_v22  ;;  %2060 = vrcp.f32 %v1614_v40  ;;  %v1649_v28 = vadd.f32 %v1648_v43, %v1647_v33  ;;  %v1676_v48 = vrot.slane %v1675_v56, 1 }
 0x1a5   :  { %2062 = vrcp.f32 %v1621_v20  ;;  %v1182_v62 = vadd.f32 %v1181_v63, %v1123_v37  ;;  %v1656_v4 = vadd.f32 %v1655_v6, %v1654_v50  ;;  %v1683_v38 = vrot.slane %v1682_v2, 1  ;;  %v3596_v6 = vld [vmem:[#allocation5_spill] sm:$0xff] }
 0x1a6   :  { %2064 = vrcp.f32 %v1628_v49  ;;  %v1663_v44 = vadd.f32 %v1662_v42, %v1661_v52  ;;  %v1690_v34 = vrot.slane %v1689_v12, 1  ;;  %v1221_v26 = vadd.f32 %v3339_v31, %v3325_v1 }
 0x1a7   :  { %v3341_v21 = vpop.eup %2054  ;;  %2066 = vrcp.f32 %v1635_v29  ;;  %v1670_v15 = vadd.f32 %v1669_v14, %v1668_v55  ;;  %v1697_v19 = vrot.slane %v1696_v8, 1  ;;  %v1677_v37 = vadd.f32 %v1676_v48, %v1675_v56  ;;  %v3602_v14 = vld [vmem:[#allocation10_spill] sm:$0xff] }
 0x1a8   :  { %v3343_v59 = vpop.eup %2056  ;;  %2068 = vrcp.f32 %v1642_v0  ;;  %v1227_v30 = vadd.f32 %v1226_v25, %v1182_v62  ;;  %v1684_v22 = vadd.f32 %v1683_v38, %v1682_v2  ;;  %v1691_v5 = vadd.f32 %v1690_v34, %v1689_v12  ;;  %v3604_v62 = vld [vmem:[#allocation12_spill] sm:$0xff]  ;;  %v3605_v38 = vld [vmem:[#allocation13_spill] sm:$0xff]  ;;  %v3607_v34 = vld [vmem:[#allocation14_spill] sm:$0xff] }
 0x1a9   :  { %v3347_v54 = vpop.eup %2058  ;;  %2070 = vrcp.f32 %v1649_v28  ;;  %v1698_v3 = vadd.f32 %v1697_v19, %v1696_v8  ;;  %v3603_v28 = vld [vmem:[#allocation11_spill] sm:$0xff] }
 0x1aa   :  { %v3349_v32 = vpop.eup %2060  ;;  %2072 = vrcp.f32 %v1656_v4 }
 0x1ab   :  { %v3351_v7 = vpop.eup %2062  ;;  %2074 = vrcp.f32 %v1663_v44 }
 0x1ac   :  { %v3353_v1 = vpop.eup %2064  ;;  %2076 = vrcp.f32 %v1670_v15 }
 0x1ad   :  { %v3357_v58 = vpop.eup %2066  ;;  %2078 = vrcp.f32 %v1677_v37 }
 0x1ae   :  { %v3359_v36 = vpop.eup %2068  ;;  %2080 = vrcp.f32 %v1684_v22 }
 0x1af   :  { %3595 = vst [vmem:[#allocation23_spill] sm:$0xff] %v3359_v36  ;;  %v3363_v35 = vpop.eup %2070  ;;  %2082 = vrcp.f32 %v1691_v5 }
 0x1b0   :  { %v3365_v25 = vpop.eup %2072  ;;  %2084 = vrcp.f32 %v1698_v3 }
 0x1b1   :  { %v3373_v41 = vpop.eup %2074 }
 0x1b2   :  { %v3383_v56 = vpop.eup %2076 }
 0x1b3   :  { %v3393_v49 = vpop.eup %2078 }
 0x1b4   :  { %v3403_v2 = vpop.eup %2080 }
 0x1c1   :  { %v1295_v46 = vpop.f32.mrf.mxu0 }
 0x1c2   :  { %v1296_v24 = vadd.f32 %v1295_v46, %v1221_v26 }
 0x1c8   :  { %v1340_v57 = vpop.f32.mrf.mxu3 }
 0x1c9   :  { %v1299_v23 = vpop.f32.mrf.mxu2  ;;  %v1336_v33 = vpop.f32.mrf.mxu1 }
 0x1ca   :  { %v1300_v31 = vadd.f32 %v1299_v23, %v1227_v30  ;;  %v3355_v50 = vadd.f32 %v1336_v33, %v1296_v24 }
 0x1cc   :  { %v3361_v52 = vadd.f32 %v1340_v57, %v1300_v31  ;;  %v1699_v40 = vmul.f32 %v3215_v47, %v3355_v50  ;;  %v1701_v61 = vmul.f32 %v3222_v16, %v3355_v50  ;;  %v1703_v55 = vmul.f32 %v3228_v17, %v3355_v50 }
 0x1cd   :  { %v1705_v63 = vmul.f32 %v3235_v45, %v3355_v50  ;;  %v1707_v20 = vmul.f32 %v3242_v60, %v3355_v50  ;;  %v1709_v43 = vmul.f32 %v3250_v9, %v3355_v50  ;;  %v1711_v47 = vmul.f32 %v3257_v13, %v3355_v50 }
 0x1ce   :  { %v1700_v16 = vmul.f32 %v3218_v39, %v3361_v52  ;;  %v1702_v17 = vmul.f32 %v3225_v53, %v3361_v52  ;;  %v1704_v45 = vmul.f32 %v3231_v10, %v3361_v52  ;;  %v1706_v60 = vmul.f32 %v3238_v27, %v3361_v52  ;;  %v3597_v10 = vld [vmem:[#allocation6_spill] sm:$0xff]  ;;  %v3598_v27 = vld [vmem:[#allocation7_spill] sm:$0xff] }
 0x1cf   :  { %v1708_v9 = vmul.f32 %v3245_v18, %v3361_v52  ;;  %v1710_v13 = vmul.f32 %v3253_v11, %v3361_v52  ;;  %v1712_v39 = vmul.f32 %v3260_v51, %v3361_v52  ;;  %v1713_v53 = vmul.f32 %v3596_v6, %v3355_v50  ;;  %v3599_v18 = vld [vmem:[#allocation8_spill] sm:$0xff]  ;;  %v3600_v11 = vld [vmem:[#allocation9_spill] sm:$0xff]  ;;  %v3419_v51 = vpop.eup %2082 }
 0x1d0   :  { %v1714_v29 = vmul.f32 %v3597_v10, %v3361_v52  ;;  %v3409_v42 = vmul.f32 %v3598_v27, %v3355_v50  ;;  %v3413_v12 = vmul.f32 %v3599_v18, %v3361_v52  ;;  %v3417_v0 = vmul.f32 %v3600_v11, %v3355_v50  ;;  %3601 = vst [vmem:[#allocation5_spill] sm:$0xff] %v3419_v51  ;;  %v3433_v44 = vpop.eup %2084 }
 0x1d1   :  { %v3423_v8 = vmul.f32 %v3602_v14, %v3361_v52  ;;  %v3427_v48 = vmul.f32 %v3603_v28, %v3355_v50  ;;  %v1720_v4 = vmul.f32 %v3604_v62, %v3361_v52  ;;  %v1721_v46 = vmul.f32 %v3605_v38, %v3355_v50  ;;  %3606 = vst [vmem:[#allocation6_spill] sm:$0xff] %v3433_v44 }
 0x1d2   :  { %v1722_v26 = vmul.f32 %v3607_v34, %v3361_v52  ;;  %v1731_v15 = vadd.f32 %v1700_v16, %v1699_v40  ;;  %v1738_v19 = vadd.f32 %v1702_v17, %v1701_v61  ;;  %v1745_v37 = vadd.f32 %v1704_v45, %v1703_v55 }
 0x1d3   :  { %v1752_v24 = vadd.f32 %v1706_v60, %v1705_v63  ;;  %v1759_v30 = vadd.f32 %v1708_v9, %v1707_v20  ;;  %v1766_v57 = vadd.f32 %v1710_v13, %v1709_v43  ;;  %v1773_v22 = vadd.f32 %v1712_v39, %v1711_v47 }
 0x1d4   :  { %v1732_v23 = vrot.slane %v1731_v15, 4  ;;  %v1739_v33 = vrot.slane %v1738_v19, 4  ;;  %v1746_v5 = vrot.slane %v1745_v37, 4  ;;  %v1780_v31 = vadd.f32 %v1714_v29, %v1713_v53 }
 0x1d5   :  { %v1753_v3 = vrot.slane %v1752_v24, 4  ;;  %v1760_v6 = vrot.slane %v1759_v30, 4  ;;  %v1767_v10 = vrot.slane %v1766_v57, 4  ;;  %v1774_v27 = vrot.slane %v1773_v22, 4 }
 0x1d6   :  { %v1733_v18 = vadd.f32 %v1732_v23, %v1731_v15  ;;  %v1740_v11 = vadd.f32 %v1739_v33, %v1738_v19  ;;  %v1747_v14 = vadd.f32 %v1746_v5, %v1745_v37  ;;  %v1781_v28 = vrot.slane %v1780_v31, 4  ;;  %v3608_v19 = vld [vmem:[#allocation15_spill] sm:$0xff]  ;;  %v3611_v33 = vld [vmem:[#allocation18_spill] sm:$0xff] }
 0x1d7   :  { %v1754_v62 = vadd.f32 %v1753_v3, %v1752_v24  ;;  %v1761_v40 = vadd.f32 %v1760_v6, %v1759_v30  ;;  %v1768_v61 = vadd.f32 %v1767_v10, %v1766_v57  ;;  %v1775_v55 = vadd.f32 %v1774_v27, %v1773_v22  ;;  %v3609_v24 = vld [vmem:[#allocation16_spill] sm:$0xff]  ;;  %v3610_v57 = vld [vmem:[#allocation17_spill] sm:$0xff] }
 0x1d8   :  { %v1734_v63 = vrot.slane %v1733_v18, 2  ;;  %v1741_v20 = vrot.slane %v1740_v11, 2  ;;  %v1748_v43 = vrot.slane %v1747_v14, 2  ;;  %v1782_v47 = vadd.f32 %v1781_v28, %v1780_v31  ;;  %v3612_v31 = vld [vmem:[#allocation19_spill] sm:$0xff]  ;;  %v3613_v6 = vld [vmem:[#allocation20_spill] sm:$0xff]  ;;  %v3614_v27 = vld [vmem:[#allocation21_spill] sm:$0xff] }
 0x1d9   :  { %v1755_v16 = vrot.slane %v1754_v62, 2  ;;  %v1762_v17 = vrot.slane %v1761_v40, 2  ;;  %v1769_v45 = vrot.slane %v1768_v61, 2  ;;  %v1776_v60 = vrot.slane %v1775_v55, 2 }
 0x1da   :  { %v3437_v9 = vadd.f32 %v1734_v63, %v1733_v18  ;;  %v3439_v13 = vadd.f32 %v1741_v20, %v1740_v11  ;;  %v3441_v39 = vadd.f32 %v1748_v43, %v1747_v14  ;;  %v1783_v53 = vrot.slane %v1782_v47, 2  ;;  %v3615_v11 = vld [vmem:[#allocation22_spill] sm:$0xff] }
 0x1db   :  { %v3443_v29 = vadd.f32 %v1755_v16, %v1754_v62  ;;  %v3445_v38 = vadd.f32 %v1762_v17, %v1761_v40  ;;  %v3447_v34 = vadd.f32 %v1769_v45, %v1768_v61  ;;  %v3449_v15 = vadd.f32 %v1776_v60, %v1775_v55 }
 0x1dc   :  { %v1723_v37 = vmul.f32 %v3608_v19, %v3355_v50  ;;  %v1724_v30 = vmul.f32 %v3609_v24, %v3361_v52  ;;  %v1725_v22 = vmul.f32 %v3610_v57, %v3355_v50  ;;  %v3457_v23 = vadd.f32 %v1783_v53, %v1782_v47 }
 0x1dd   :  { %v1726_v5 = vmul.f32 %v3611_v33, %v3361_v52  ;;  %v1727_v3 = vmul.f32 %v3612_v31, %v3355_v50  ;;  %v1728_v10 = vmul.f32 %v3613_v6, %v3361_v52  ;;  %v1729_v18 = vmul.f32 %v3614_v27, %v3355_v50 }
 0x1de   :  { %v1730_v14 = vmul.f32 %v3615_v11, %v3361_v52  ;;  %v1736_v28 = vrot.slane %v3437_v9, 1  ;;  %v1743_v62 = vrot.slane %v3439_v13, 1  ;;  %v1750_v40 = vrot.slane %v3441_v39, 1 }
 0x1df   :  { %v1757_v61 = vrot.slane %v3443_v29, 1  ;;  %v1764_v55 = vrot.slane %v3445_v38, 1  ;;  %v1771_v63 = vrot.slane %v3447_v34, 1  ;;  %v1778_v20 = vrot.slane %v3449_v15, 1 }
 0x1e0   :  { %v1785_v43 = vrot.slane %v3457_v23, 1  ;;  %v1787_v50 = vadd.f32 %v3413_v12, %v3409_v42  ;;  %v1794_v52 = vadd.f32 %v3423_v8, %v3417_v0  ;;  %v1801_v47 = vadd.f32 %v1720_v4, %v3427_v48 }
 0x1e1   :  { %v1808_v16 = vadd.f32 %v1722_v26, %v1721_v46  ;;  %v1815_v17 = vadd.f32 %v1724_v30, %v1723_v37  ;;  %v1822_v45 = vadd.f32 %v1726_v5, %v1725_v22  ;;  %v1829_v60 = vadd.f32 %v1728_v10, %v1727_v3 }
 0x1e2   :  { %v1788_v53 = vrot.slane %v1787_v50, 4  ;;  %v1795_v19 = vrot.slane %v1794_v52, 4  ;;  %v1802_v24 = vrot.slane %v1801_v47, 4  ;;  %v1836_v57 = vadd.f32 %v1730_v14, %v1729_v18 }
 0x1e3   :  { %v1809_v33 = vrot.slane %v1808_v16, 4  ;;  %v1816_v31 = vrot.slane %v1815_v17, 4  ;;  %v1823_v6 = vrot.slane %v1822_v45, 4  ;;  %v1830_v27 = vrot.slane %v1829_v60, 4 }
 0x1e4   :  { %v1789_v11 = vadd.f32 %v1788_v53, %v1787_v50  ;;  %v1796_v44 = vadd.f32 %v1795_v19, %v1794_v52  ;;  %v1803_v42 = vadd.f32 %v1802_v24, %v1801_v47  ;;  %v1837_v12 = vrot.slane %v1836_v57, 4 }
 0x1e5   :  { %v1810_v51 = vadd.f32 %v1809_v33, %v1808_v16  ;;  %v1817_v0 = vadd.f32 %v1816_v31, %v1815_v17  ;;  %v1824_v8 = vadd.f32 %v1823_v6, %v1822_v45  ;;  %v1831_v48 = vadd.f32 %v1830_v27, %v1829_v60 }
 0x1e6   :  { %v1790_v4 = vrot.slane %v1789_v11, 2  ;;  %v1797_v46 = vrot.slane %v1796_v44, 2  ;;  %v1804_v26 = vrot.slane %v1803_v42, 2  ;;  %v1838_v37 = vadd.f32 %v1837_v12, %v1836_v57 }
 0x1e7   :  { %v1811_v30 = vrot.slane %v1810_v51, 2  ;;  %v1818_v22 = vrot.slane %v1817_v0, 2  ;;  %v1825_v5 = vrot.slane %v1824_v8, 2  ;;  %v1832_v3 = vrot.slane %v1831_v48, 2 }
 0x1e8   :  { %v1791_v10 = vadd.f32 %v1790_v4, %v1789_v11  ;;  %v1798_v18 = vadd.f32 %v1797_v46, %v1796_v44  ;;  %v1805_v14 = vadd.f32 %v1804_v26, %v1803_v42  ;;  %v1839_v36 = vrot.slane %v1838_v37, 2 }
 0x1e9   :  { %v1812_v50 = vadd.f32 %v1811_v30, %v1810_v51  ;;  %v1819_v52 = vadd.f32 %v1818_v22, %v1817_v0  ;;  %v1826_v47 = vadd.f32 %v1825_v5, %v1824_v8  ;;  %v1833_v53 = vadd.f32 %v1832_v3, %v1831_v48 }
 0x1ea   :  { %v1792_v16 = vrot.slane %v1791_v10, 1  ;;  %v1799_v17 = vrot.slane %v1798_v18, 1  ;;  %v1806_v45 = vrot.slane %v1805_v14, 1  ;;  %v1840_v60 = vadd.f32 %v1839_v36, %v1838_v37  ;;  %v3618_v37 = vld [vmem:[#allocation6_spill] sm:$0xff] }
 0x1eb   :  { %v1737_v19 = vadd.f32 %v1736_v28, %v3437_v9  ;;  %v1744_v24 = vadd.f32 %v1743_v62, %v3439_v13  ;;  %v1813_v57 = vrot.slane %v1812_v50, 1  ;;  %v1820_v33 = vrot.slane %v1819_v52, 1 }
 0x1ec   :  { %v1751_v31 = vadd.f32 %v1750_v40, %v3441_v39  ;;  %v1793_v6 = vadd.f32 %v1792_v16, %v1791_v10  ;;  %v1800_v44 = vadd.f32 %v1799_v17, %v1798_v18  ;;  %v1827_v27 = vrot.slane %v1826_v47, 1 }
 0x1ed   :  { %v1758_v51 = vadd.f32 %v1757_v61, %v3443_v29  ;;  %v1807_v11 = vadd.f32 %v1806_v45, %v1805_v14  ;;  %v1834_v42 = vrot.slane %v1833_v53, 1  ;;  %v1841_v12 = vrot.slane %v1840_v60, 1 }
 0x1ee   :  { %v1765_v0 = vadd.f32 %v1764_v55, %v3445_v38  ;;  %v1772_v36 = vadd.f32 %v1771_v63, %v3447_v34  ;;  %v1779_v9 = vadd.f32 %v1778_v20, %v3449_v15  ;;  %v1786_v13 = vadd.f32 %v1785_v43, %v3457_v23  ;;  %v3616_v20 = vld [vmem:[#allocation23_spill] sm:$0xff] }
 0x1ef   :  { %v1814_v28 = vadd.f32 %v1813_v57, %v1812_v50  ;;  %v1821_v62 = vadd.f32 %v1820_v33, %v1819_v52  ;;  %v1859_v39 = vmul.f32 %v3341_v21, %v1737_v19  ;;  %v1860_v40 = vmul.f32 %v3343_v59, %v1744_v24 }
 0x1f0   :  { %v1828_v8 = vadd.f32 %v1827_v27, %v1826_v47  ;;  %v1861_v29 = vmul.f32 %v3347_v54, %v1751_v31  ;;  %v1867_v61 = vmul.f32 %v3363_v35, %v1793_v6  ;;  %v1868_v48 = vmul.f32 %v3365_v25, %v1800_v44 }
 0x1f1   :  { %v1835_v38 = vadd.f32 %v1834_v42, %v1833_v53  ;;  %v1842_v55 = vadd.f32 %v1841_v12, %v1840_v60  ;;  %v1862_v34 = vmul.f32 %v3349_v32, %v1758_v51  ;;  %v1869_v15 = vmul.f32 %v3373_v41, %v1807_v11 }
 0x1f2   :  { %v1863_v23 = vmul.f32 %v3351_v7, %v1765_v0  ;;  %v1864_v21 = vmul.f32 %v3353_v1, %v1772_v36  ;;  %v1865_v59 = vmul.f32 %v3357_v58, %v1779_v9  ;;  %v1892_v54 = vsel %vm1891_vm5, %v1860_v40, %v1859_v39 }
 0x1f3   :  { %v1870_v35 = vmul.f32 %v3383_v56, %v1814_v28  ;;  %v1894_v25 = vsel %vm1893_vm6, %v1861_v29, %v1892_v54  ;;  %v1905_v63 = vsel %vm1891_vm5, %v1868_v48, %v1867_v61  ;;  %v1871_v32 = vmul.f32 %v3393_v49, %v1821_v62  ;;  %v3617_v49 = vld [vmem:[#allocation5_spill] sm:$0xff] }
 0x1f4   :  { %v1896_v41 = vsel %vm1895_vm7, %v1862_v34, %v1894_v25  ;;  %v1906_v7 = vsel %vm1893_vm6, %v1869_v15, %v1905_v63  ;;  %v1872_v1 = vmul.f32 %v3403_v2, %v1828_v8  ;;  %v1866_v43 = vmul.f32 %v3616_v20, %v1786_v13 }
 0x1f5   :  { %v1898_v58 = vsel %vm1897_vm8, %v1863_v23, %v1896_v41  ;;  %v1907_v56 = vsel %vm1895_vm7, %v1870_v35, %v1906_v7  ;;  %v1873_v4 = vmul.f32 %v3617_v49, %v1835_v38  ;;  %v1874_v30 = vmul.f32 %v3618_v37, %v1842_v55 }
 0x1f6   :  { %v1900_v46 = vsel %vm1899_vm9, %v1864_v21, %v1898_v58  ;;  %v1908_v26 = vsel %vm1897_vm8, %v1871_v32, %v1907_v56 }
 0x1f7   :  { %v1902_v22 = vsel %vm1901_vm10, %v1865_v59, %v1900_v46  ;;  %v1909_v5 = vsel %vm1899_vm9, %v1872_v1, %v1908_v26 }
 0x1f8   :  { %v1904_v2 = vsel %vm1903_vm11, %v1866_v43, %v1902_v22  ;;  %v1910_v3 = vsel %vm1901_vm10, %v1873_v4, %v1909_v5 }
 0x1f9   :  { %v1911_v10 = vsel %vm1903_vm11, %v1874_v30, %v1910_v3  ;;  %1914 = vst [vmem:[#allocation2] sm:$0xff] %v1904_v2 }
 0x1fa   :  { %1915 = vst [vmem:[#allocation2 + $0x8] sm:$0xff] %v1911_v10 }
 0x1fb   :  { %1928 = dma.vmem_to_hbm [thread:$0]  %s1921_s0, 256, %s1923_s25, [#allocation3], %s2114_s3, %s2114_s3, %s2115_s26  }
 0x1fc   :  { %2110 = dma.done.wait [#allocation3], 256  }
 0x1fd   :  { %2111 = vsyncadd [#allocation3], 4294967040 }
 0x1fe   :  { %1933 = vsyncpa [#allocation3], 1 }

</bundles_post_ra>
